<compile_context>
chip_gen: v6e
topology: v6e:2x2x1
jax: 0.10.0
libtpu: 0.0.40
codegen_flags: <defaults>
</compile_context>

<pallas_src>
import functools

import jax
import jax.numpy as jnp
from jax.experimental import pallas as pl
from jax.experimental.pallas import tpu as pltpu


# ----------------------------------------------------------------------------
# Small helpers
# ----------------------------------------------------------------------------
def _leaky_relu(x):
    return jnp.where(x >= 0.0, x, 0.2 * x)


@functools.lru_cache()
def _vmem_limit_bytes():
    """Generation-aware scoped-VMEM budget (~48 MiB on v7x, ~96 MiB v5e/v6e)."""
    cap = 64 * 1024 * 1024
    try:
        cap = int(getattr(pltpu.get_tpu_info(), "vmem_capacity_bytes", cap))
    except Exception:
        pass
    return int(min(cap * 3 // 4, 96 * 1024 * 1024))


def _pick_tile_m(m):
    """Largest M-block that divides M exactly (no pad / slice copies)."""
    for t in (1024, 512, 256, 128, 96, 64, 48, 32, 24, 16, 8):
        if t <= m and m % t == 0:
            return t
    return m  # tiny / odd M: a single full-M block (full-dim blocks are legal)


# ----------------------------------------------------------------------------
# Pallas kernels
# ----------------------------------------------------------------------------
def _matmul_lrelu_kernel(p_ref, w_ref, o_ref):
    """One M-tile of LeakyReLU_{0.2}(p @ w); bf16 operands, f32 accumulation."""
    acc = jnp.dot(p_ref[...], w_ref[...], preferred_element_type=jnp.float32)
    o_ref[...] = _leaky_relu(acc).astype(o_ref.dtype)


def _conv_bn_lrelu_kernel(p_ref, w_ref, g_ref, b_ref, o_ref, y_ref, sum_ref):
    """M-tiled conv-matmul + training-mode BatchNorm + LeakyReLU(0.2).

    Per step: matmul one (tm, K) patch tile into the resident (M, C) f32
    scratch and accumulate per-channel partial sums.  Last step: centered
    two-pass variance over the scratch, then chunk-wise normalize + LReLU
    into the (resident, constant-index) output block.
    """
    i = pl.program_id(0)
    tm = p_ref.shape[0]
    M, _ = y_ref.shape
    n_tiles = M // tm

    @pl.when(i == 0)
    def _():
        sum_ref[...] = jnp.zeros_like(sum_ref)

    y = jnp.dot(p_ref[...], w_ref[...], preferred_element_type=jnp.float32)
    start = pl.multiple_of(i * tm, 8) if tm % 8 == 0 else i * tm
    y_ref[pl.ds(start, tm), :] = y
    sum_ref[...] += jnp.sum(y, axis=0, keepdims=True)

    @pl.when(i == pl.num_programs(0) - 1)
    def _():
        inv_m = 1.0 / M
        mean = sum_ref[...] * inv_m                                   # (1, C)
        var = jnp.zeros_like(mean)
        for j in range(n_tiles):                   # centered (two-pass) variance
            d = y_ref[pl.ds(j * tm, tm), :] - mean
            var = var + jnp.sum(d * d, axis=0, keepdims=True)
        var = var * inv_m
        scale = jax.lax.rsqrt(var + 1e-5) * g_ref[...]
        shift = b_ref[...] - mean * scale
        for j in range(n_tiles):                   # chunked normalize + LReLU
            a = y_ref[pl.ds(j * tm, tm), :] * scale + shift
            o_ref[pl.ds(j * tm, tm), :] = _leaky_relu(a).astype(o_ref.dtype)


def _conv_bn_lrelu_head_kernel(p_ref, w_ref, g_ref, b_ref, w4_ref, tap_ref,
                               grp_ref, o_ref, y_ref, sum_ref, row_ref):
    """M-tiled conv3 + BN + LReLU + final 3x3 valid conv (Cout=1) + sigmoid.

    The BN+LReLU activation never leaves VMEM.  The head conv reduces over C
    first on the MXU (a @ w4 -> (M, 9)), picks each row's spatial tap with an
    iota mask, and group-sums the 9 contributions per sample with an in-kernel
    iota selection matmul.
    """
    i = pl.program_id(0)
    tm = p_ref.shape[0]
    M, _ = y_ref.shape
    n_batch = o_ref.shape[0]
    spatial = w4_ref.shape[1]          # 9 = 3x3 positions feeding the head conv
    n_tiles = M // tm

    @pl.when(i == 0)
    def _():
        sum_ref[...] = jnp.zeros_like(sum_ref)

    y = jnp.dot(p_ref[...], w_ref[...], preferred_element_type=jnp.float32)
    start = pl.multiple_of(i * tm, 8) if tm % 8 == 0 else i * tm
    y_ref[pl.ds(start, tm), :] = y
    sum_ref[...] += jnp.sum(y, axis=0, keepdims=True)

    @pl.when(i == pl.num_programs(0) - 1)
    def _():
        inv_m = 1.0 / M
        mean = sum_ref[...] * inv_m
        var = jnp.zeros_like(mean)
        for j in range(n_tiles):                   # centered (two-pass) variance
            d = y_ref[pl.ds(j * tm, tm), :] - mean
            var = var + jnp.sum(d * d, axis=0, keepdims=True)
        var = var * inv_m
        scale = jax.lax.rsqrt(var + 1e-5) * g_ref[...]
        shift = b_ref[...] - mean * scale
        for j in range(n_tiles):
            a = _leaky_relu(y_ref[pl.ds(j * tm, tm), :] * scale + shift)  # (tm,C) f32
            # C-first reduction on the MXU, then per-row tap pick (XLU/VPU).
            h = jnp.dot(a, w4_ref[...], preferred_element_type=jnp.float32)  # (tm, 9)
            p_ids = jax.lax.broadcasted_iota(jnp.int32, (tm, spatial), 1)
            tap = tap_ref[pl.ds(j * tm, tm), :]                              # (tm, 1)
            picked = jnp.where(p_ids == tap, h, 0.0)
            row_ref[pl.ds(j * tm, tm), :] = jnp.sum(picked, axis=1, keepdims=True)
        # Grouped per-sample sum of the 9 spatial contributions + sigmoid.
        n_ids = jax.lax.broadcasted_iota(jnp.int32, (n_batch, M), 0)
        sel = (n_ids == grp_ref[...]).astype(jnp.float32)                    # (N, M)
        logits = jnp.dot(sel, row_ref[...], preferred_element_type=jnp.float32)
        o_ref[...] = 1.0 / (1.0 + jnp.exp(-logits))


# ----------------------------------------------------------------------------
# pallas_call wrappers
# ----------------------------------------------------------------------------
def _conv1_lrelu(p, w):
    """LeakyReLU(p @ w), M-tiled, grid axis parallel (megacore/TC sharding)."""
    M, K = p.shape
    cout = w.shape[1]
    tm = _pick_tile_m(M)
    return pl.pallas_call(
        _matmul_lrelu_kernel,
        out_shape=jax.ShapeDtypeStruct((M, cout), jnp.bfloat16),
        grid=(M // tm,),
        in_specs=[
            pl.BlockSpec((tm, K), lambda i: (i, 0)),
            pl.BlockSpec((K, cout), lambda i: (0, 0)),
        ],
        out_specs=pl.BlockSpec((tm, cout), lambda i: (i, 0)),
        compiler_params=pltpu.CompilerParams(
            dimension_semantics=("parallel",),
            vmem_limit_bytes=_vmem_limit_bytes()),
    )(p, w)


def _conv_bn_lrelu(p, w, gamma, beta):
    """Fused conv-matmul + BN + LeakyReLU, M-tiled with resident f32 scratch."""
    M, K = p.shape
    C = w.shape[1]
    tm = _pick_tile_m(M)
    return pl.pallas_call(
        _conv_bn_lrelu_kernel,
        out_shape=jax.ShapeDtypeStruct((M, C), jnp.bfloat16),
        grid=(M // tm,),
        in_specs=[
            pl.BlockSpec((tm, K), lambda i: (i, 0)),
            pl.BlockSpec((K, C), lambda i: (0, 0)),
            pl.BlockSpec((1, C), lambda i: (0, 0)),
            pl.BlockSpec((1, C), lambda i: (0, 0)),
        ],
        out_specs=pl.BlockSpec((M, C), lambda i: (0, 0)),
        scratch_shapes=[pltpu.VMEM((M, C), jnp.float32),
                        pltpu.VMEM((1, C), jnp.float32)],
        compiler_params=pltpu.CompilerParams(
            dimension_semantics=("arbitrary",),
            vmem_limit_bytes=_vmem_limit_bytes()),
    )(p, w,
      gamma.reshape(1, C).astype(jnp.float32),
      beta.reshape(1, C).astype(jnp.float32))


def _conv_bn_lrelu_head(p, w, gamma, beta, w4c, n_batch):
    """Fused conv3 + BN + LReLU + final 1-channel conv + sigmoid -> (N, 1)."""
    M, K = p.shape
    C = w.shape[1]
    spatial = w4c.shape[1]
    assert M == n_batch * spatial
    tm = _pick_tile_m(M)
    # Tiny O(M) index vectors (no O(N*C) weight tiling / O(N^2) sel matrix).
    tap_ids = (jnp.arange(M, dtype=jnp.int32) % spatial).reshape(M, 1)
    grp_ids = (jnp.arange(M, dtype=jnp.int32) // spatial).reshape(1, M)
    return pl.pallas_call(
        _conv_bn_lrelu_head_kernel,
        out_shape=jax.ShapeDtypeStruct((n_batch, 1), jnp.float32),
        grid=(M // tm,),
        in_specs=[
            pl.BlockSpec((tm, K), lambda i: (i, 0)),
            pl.BlockSpec((K, C), lambda i: (0, 0)),
            pl.BlockSpec((1, C), lambda i: (0, 0)),
            pl.BlockSpec((1, C), lambda i: (0, 0)),
            pl.BlockSpec((C, spatial), lambda i: (0, 0)),
            pl.BlockSpec((M, 1), lambda i: (0, 0)),
            pl.BlockSpec((1, M), lambda i: (0, 0)),
        ],
        out_specs=pl.BlockSpec((n_batch, 1), lambda i: (0, 0)),
        scratch_shapes=[pltpu.VMEM((M, C), jnp.float32),
                        pltpu.VMEM((1, C), jnp.float32),
                        pltpu.VMEM((M, 1), jnp.float32)],
        compiler_params=pltpu.CompilerParams(
            dimension_semantics=("arbitrary",),
            vmem_limit_bytes=_vmem_limit_bytes()),
    )(p, w,
      gamma.reshape(1, C).astype(jnp.float32),
      beta.reshape(1, C).astype(jnp.float32),
      w4c.astype(jnp.float32), tap_ids, grp_ids)


# ----------------------------------------------------------------------------
# Glue: im2col + weight reshaping (plain JAX, emitted in bf16)
# ----------------------------------------------------------------------------
def _im2col(x_nhwc, k, stride, pad):
    """x:(N,H,W,C) -> patches:(N*OH*OW, k*k*C) with (ki,kj,c) column order."""
    N, H, W, C = x_nhwc.shape
    xp = jnp.pad(x_nhwc, ((0, 0), (pad, pad), (pad, pad), (0, 0)))
    OH = (H + 2 * pad - k) // stride + 1
    OW = (W + 2 * pad - k) // stride + 1
    cols = []
    for i in range(k):
        for j in range(k):
            cols.append(xp[:, i:i + stride * OH:stride, j:j + stride * OW:stride, :])
    patches = jnp.concatenate(cols, axis=-1)                  # (N,OH,OW,k*k*C)
    return patches.reshape(N * OH * OW, k * k * C), N, OH, OW


def _wmat(w_oihw, dtype=jnp.bfloat16):
    """PyTorch (Cout,Cin,kh,kw) -> (kh*kw*Cin, Cout) matching _im2col columns."""
    cout = w_oihw.shape[0]
    return jnp.transpose(w_oihw, (2, 3, 1, 0)).reshape(-1, cout).astype(dtype)


# ----------------------------------------------------------------------------
# Full forward pass
# ----------------------------------------------------------------------------
def discriminator_forward(img_nchw, params):
    # NCHW -> NHWC, bf16 feed for the MXU (accumulation stays f32 in-kernel).
    x = jnp.transpose(img_nchw, (0, 2, 3, 1)).astype(jnp.bfloat16)

    # layer 1: conv(1->F, k4 s2 p1) + LeakyReLU
    p, N, OH, OW = _im2col(x, 4, 2, 1)
    y = _conv1_lrelu(p, _wmat(params["w1"]))
    x = y.reshape(N, OH, OW, -1)

    # layer 2: conv(F->2F, k4 s2 p1) + BatchNorm + LeakyReLU (one fused kernel)
    p, N, OH, OW = _im2col(x, 4, 2, 1)
    y = _conv_bn_lrelu(p, _wmat(params["w2"]), params["g2"], params["b2"])
    x = y.reshape(N, OH, OW, -1)

    # layers 3+4: conv(2F->4F) + BN + LReLU + conv(4F->1, k3 s1 p0) + Sigmoid
    p, N, OH, OW = _im2col(x, 4, 2, 1)
    assert OH == 3 and OW == 3, "fused head assumes the final 3x3 valid conv -> 1x1"
    c4in = params["w4"].shape[1]
    w4c = params["w4"].reshape(c4in, OH * OW)      # (4F, 9); column = ki*3 + kj
    out = _conv_bn_lrelu_head(p, _wmat(params["w3"]), params["g3"], params["b3"],
                              w4c, N)
    # PyTorch: .view(-1, 1); final conv output is (N,1,1,1) -> (N,1).
    return out


# ----------------------------------------------------------------------------
# Pure-JAX reference (lax.conv) with matching bf16 quantization points
# ----------------------------------------------------------------------------
def _reference(img_nchw, params):
    f32, bf16 = jnp.float32, jnp.bfloat16

    def conv(x, w_oihw, stride, pad, in_dtype):
        w = jnp.transpose(w_oihw, (2, 3, 1, 0)).astype(in_dtype)  # HWIO
        return jax.lax.conv_general_dilated(
            x.astype(in_dtype), w, (stride, stride), [(pad, pad), (pad, pad)],
            dimension_numbers=("NHWC", "HWIO", "NHWC"),
            preferred_element_type=f32)

    def bn(x, g, b):
        m = jnp.mean(x, axis=(0, 1, 2), keepdims=True)
        v = jnp.mean((x - m) ** 2, axis=(0, 1, 2), keepdims=True)
        return (x - m) * jax.lax.rsqrt(v + 1e-5) * g + b

    lrelu = lambda t: jnp.where(t >= 0, t, 0.2 * t)

    x = jnp.transpose(img_nchw, (0, 2, 3, 1)).astype(f32)
    x = lrelu(conv(x, params["w1"], 2, 1, bf16)).astype(bf16)
    x = lrelu(bn(conv(x, params["w2"], 2, 1, bf16),
                 params["g2"], params["b2"])).astype(bf16)
    x = lrelu(bn(conv(x, params["w3"], 2, 1, bf16),
                 params["g3"], params["b3"]))
    x = jax.nn.sigmoid(conv(x, params["w4"], 1, 0, f32))
    return x.reshape(-1, 1)


# ----------------------------------------------------------------------------
# Main
# ----------------------------------------------------------------------------
if __name__ == "__main__":
    key = jax.random.PRNGKey(0)
    k_img, k1, k2, k3, k4, kg2, kb2, kg3, kb3 = jax.random.split(key, 9)

    F = 32               # feature_dim (same structure as latent_dim=128, small for test)
    N, H, W = 2, 24, 24  # 24 -> 12 -> 6 -> 3 -> 1x1 after the final 3x3 valid conv

    img = jax.random.normal(k_img, (N, 1, H, W), dtype=jnp.float32)

    def conv_init(k, cout, cin, ks):
        fan_in = cin * ks * ks
        return (jax.random.normal(k, (cout, cin, ks, ks), jnp.float32)
                * (1.0 / jnp.sqrt(fan_in)))

    params = {
        "w1": conv_init(k1, F, 1, 4),
        "w2": conv_init(k2, 2 * F, F, 4),
        "g2": 1.0 + 0.1 * jax.random.normal(kg2, (2 * F,), jnp.float32),
        "b2": 0.1 * jax.random.normal(kb2, (2 * F,), jnp.float32),
        "w3": conv_init(k3, 4 * F, 2 * F, 4),
        "g3": 1.0 + 0.1 * jax.random.normal(kg3, (4 * F,), jnp.float32),
        "b3": 0.1 * jax.random.normal(kb3, (4 * F,), jnp.float32),
        "w4": conv_init(k4, 1, 4 * F, 3),
    }

    out = jax.block_until_ready(jax.jit(discriminator_forward)(img, params))
    ref = jax.block_until_ready(jax.jit(_reference)(img, params))

    assert out.shape == (N, 1), out.shape
    err = float(jnp.max(jnp.abs(out - ref)))
    assert err < 3e-3, f"max abs err {err}"
    print("KERNEL_OK")
</pallas_src>

<mosaic_0001>
module attributes {stable_mosaic.version = 11 : i64} {
  func.func @_matmul_lrelu_kernel(%arg0: i32, %arg1: memref<96x16xbf16, #tpu.memory_space<vmem>>, %arg2: memref<16x32xbf16, #tpu.memory_space<vmem>>, %arg3: memref<96x32xbf16, #tpu.memory_space<vmem>>) attributes {dimension_semantics = [#tpu.dimension_semantics<parallel>], iteration_bounds = array<i64: 3>, scalar_prefetch = 0 : i64, scratch_operands = 0 : i64, tpu.core_type = #tpu.core_type<tc>, window_params = [{transform_indices = @transform_0, window_bounds = array<i64: 96, 16>}, {pipeline_mode = #tpu.pipeline_mode<synchronous>, transform_indices = @transform_1, window_bounds = array<i64: 16, 32>}, {transform_indices = @transform_2, window_bounds = array<i64: 96, 32>}]} {
    %c0 = arith.constant 0 : index
    %c0_0 = arith.constant 0 : index
    %0 = vector.load %arg1[%c0, %c0_0] : memref<96x16xbf16, #tpu.memory_space<vmem>>, vector<96x16xbf16>
    %c0_1 = arith.constant 0 : index
    %c0_2 = arith.constant 0 : index
    %1 = vector.load %arg2[%c0_1, %c0_2] : memref<16x32xbf16, #tpu.memory_space<vmem>>, vector<16x32xbf16>
    %cst = arith.constant dense<0.000000e+00> : vector<96x32xf32>
    %2 = tpu.matmul %0, %1, %cst {dimension_numbers = #tpu.dot_dimension_numbers<[1], [0], [0], [1], [0, 0, 1, 1], [], []>} : vector<96x16xbf16>, vector<16x32xbf16>, vector<96x32xf32> -> vector<96x32xf32>
    %cst_3 = arith.constant 0.000000e+00 : f32
    %3 = vector.broadcast %cst_3 : f32 to vector<96x32xf32>
    %4 = arith.cmpf oge, %2, %3 : vector<96x32xf32>
    %cst_4 = arith.constant 2.000000e-01 : f32
    %5 = vector.broadcast %cst_4 : f32 to vector<96x32xf32>
    %6 = arith.mulf %5, %2 : vector<96x32xf32>
    %7 = arith.select %4, %2, %6 : vector<96x32xi1>, vector<96x32xf32>
    %8 = arith.truncf %7 : vector<96x32xf32> to vector<96x32xbf16>
    %c0_5 = arith.constant 0 : index
    %c0_6 = arith.constant 0 : index
    %9 = vector.load %arg3[%c0_5, %c0_6] : memref<96x32xbf16, #tpu.memory_space<vmem>>, vector<96x32xbf16>
    tpu.vector_store %arg3[%c0_5, %c0_6], %8 {strides = array<i32>} : memref<96x32xbf16, #tpu.memory_space<vmem>>, vector<96x32xbf16>,
    return
  }
  func.func @transform_0(%arg0: i32) -> (i32, i32) {
    %c0_i32 = arith.constant 0 : i32
    %c0_i32_0 = arith.constant 0 : i32
    return %arg0, %c0_i32 : i32, i32
  }
  func.func @transform_1(%arg0: i32) -> (i32, i32) {
    %c0_i32 = arith.constant 0 : i32
    %c0_i32_0 = arith.constant 0 : i32
    %c0_i32_1 = arith.constant 0 : i32
    return %c0_i32, %c0_i32_0 : i32, i32
  }
  func.func @transform_2(%arg0: i32) -> (i32, i32) {
    %c0_i32 = arith.constant 0 : i32
    %c0_i32_0 = arith.constant 0 : i32
    return %arg0, %c0_i32 : i32, i32
  }
}

module attributes {stable_mosaic.version = 11 : i64} {
  func.func @_conv_bn_lrelu_kernel(%arg0: i32, %arg1: memref<24x512xbf16, #tpu.memory_space<vmem>>, %arg2: memref<512x64xbf16, #tpu.memory_space<vmem>>, %arg3: memref<1x64xf32, #tpu.memory_space<vmem>>, %arg4: memref<1x64xf32, #tpu.memory_space<vmem>>, %arg5: memref<72x64xbf16, #tpu.memory_space<vmem>>, %arg6: memref<72x64xf32, #tpu.memory_space<vmem>>, %arg7: memref<1x64xf32, #tpu.memory_space<vmem>>) attributes {dimension_semantics = [#tpu.dimension_semantics<arbitrary>], iteration_bounds = array<i64: 3>, scalar_prefetch = 0 : i64, scratch_operands = 2 : i64, tpu.core_type = #tpu.core_type<tc>, window_params = [{transform_indices = @transform_0, window_bounds = array<i64: 24, 512>}, {pipeline_mode = #tpu.pipeline_mode<synchronous>, transform_indices = @transform_1, window_bounds = array<i64: 512, 64>}, {pipeline_mode = #tpu.pipeline_mode<synchronous>, transform_indices = @transform_2, window_bounds = array<i64: 1, 64>}, {pipeline_mode = #tpu.pipeline_mode<synchronous>, transform_indices = @transform_3, window_bounds = array<i64: 1, 64>}, {pipeline_mode = #tpu.pipeline_mode<synchronous>, transform_indices = @transform_4, window_bounds = array<i64: 72, 64>}]} {
    %c0_i32 = arith.constant 0 : i32
    %0 = arith.cmpi eq, %arg0, %c0_i32 : i32
    %1 = arith.extui %0 : i1 to i32
    %c0_i32_0 = arith.constant 0 : i32
    %2 = arith.cmpi ne, %1, %c0_i32_0 : i32
    scf.if %2 {
      %cst_11 = arith.constant 0.000000e+00 : f32
      %18 = vector.broadcast %cst_11 : f32 to vector<1x64xf32>
      %c0_12 = arith.constant 0 : index
      %c0_13 = arith.constant 0 : index
      %19 = vector.load %arg7[%c0_12, %c0_13] : memref<1x64xf32, #tpu.memory_space<vmem>>, vector<1x64xf32>
      tpu.vector_store %arg7[%c0_12, %c0_13], %18 {strides = array<i32>} : memref<1x64xf32, #tpu.memory_space<vmem>>, vector<1x64xf32>,
    } else {
    }
    %c0 = arith.constant 0 : index
    %c0_1 = arith.constant 0 : index
    %3 = vector.load %arg1[%c0, %c0_1] : memref<24x512xbf16, #tpu.memory_space<vmem>>, vector<24x512xbf16>
    %c0_2 = arith.constant 0 : index
    %c0_3 = arith.constant 0 : index
    %4 = vector.load %arg2[%c0_2, %c0_3] : memref<512x64xbf16, #tpu.memory_space<vmem>>, vector<512x64xbf16>
    %cst = arith.constant dense<0.000000e+00> : vector<24x64xf32>
    %5 = tpu.matmul %3, %4, %cst {dimension_numbers = #tpu.dot_dimension_numbers<[1], [0], [0], [1], [0, 0, 1, 1], [], []>} : vector<24x512xbf16>, vector<512x64xbf16>, vector<24x64xf32> -> vector<24x64xf32>
    %c24_i32 = arith.constant 24 : i32
    %6 = arith.muli %arg0, %c24_i32 : i32
    %7 = tpu.assume_multiple %6, 8 : i32
    %8 = arith.index_cast %7 : i32 to index
    %c0_4 = arith.constant 0 : index
    %9 = vector.load %arg6[%8, %c0_4] : memref<72x64xf32, #tpu.memory_space<vmem>>, vector<24x64xf32>
    tpu.vector_store %arg6[%8, %c0_4], %5 {strides = array<i32>} : memref<72x64xf32, #tpu.memory_space<vmem>>, vector<24x64xf32>,
    %c0_5 = arith.constant 0 : index
    %c0_6 = arith.constant 0 : index
    %10 = vector.load %arg7[%c0_5, %c0_6] : memref<1x64xf32, #tpu.memory_space<vmem>>, vector<1x64xf32>
    %cst_7 = arith.constant dense<0.000000e+00> : vector<64xf32>
    %11 = vector.multi_reduction <add>, %5, %cst_7 [0] : vector<24x64xf32> to vector<64xf32>
    %12 = vector.shape_cast %11 : vector<64xf32> to vector<1x64xf32>
    %13 = arith.addf %10, %12 : vector<1x64xf32>
    %c0_8 = arith.constant 0 : index
    %c0_9 = arith.constant 0 : index
    %14 = vector.load %arg7[%c0_8, %c0_9] : memref<1x64xf32, #tpu.memory_space<vmem>>, vector<1x64xf32>
    tpu.vector_store %arg7[%c0_8, %c0_9], %13 {strides = array<i32>} : memref<1x64xf32, #tpu.memory_space<vmem>>, vector<1x64xf32>,
    %c2_i32 = arith.constant 2 : i32
    %15 = arith.cmpi eq, %arg0, %c2_i32 : i32
    %16 = arith.extui %15 : i1 to i32
    %c0_i32_10 = arith.constant 0 : i32
    %17 = arith.cmpi ne, %16, %c0_i32_10 : i32
    scf.if %17 {
      %c0_11 = arith.constant 0 : index
      %c0_12 = arith.constant 0 : index
      %18 = vector.load %arg7[%c0_11, %c0_12] : memref<1x64xf32, #tpu.memory_space<vmem>>, vector<1x64xf32>
      %cst_13 = arith.constant 0.013888889 : f32
      %19 = vector.broadcast %cst_13 : f32 to vector<1x64xf32>
      %20 = arith.mulf %18, %19 : vector<1x64xf32>
      %cst_14 = arith.constant 0.000000e+00 : f32
      %21 = vector.broadcast %cst_14 : f32 to vector<1x64xf32>
      %c0_15 = arith.constant 0 : index
      %c0_16 = arith.constant 0 : index
      %22 = vector.load %arg6[%c0_15, %c0_16] : memref<72x64xf32, #tpu.memory_space<vmem>>, vector<24x64xf32>
      %23 = vector.broadcast %20 : vector<1x64xf32> to vector<24x64xf32>
      %24 = arith.subf %22, %23 : vector<24x64xf32>
      %25 = arith.mulf %24, %24 : vector<24x64xf32>
      %cst_17 = arith.constant dense<0.000000e+00> : vector<64xf32>
      %26 = vector.multi_reduction <add>, %25, %cst_17 [0] : vector<24x64xf32> to vector<64xf32>
      %27 = vector.shape_cast %26 : vector<64xf32> to vector<1x64xf32>
      %28 = arith.addf %21, %27 : vector<1x64xf32>
      %c24 = arith.constant 24 : index
      %c0_18 = arith.constant 0 : index
      %29 = vector.load %arg6[%c24, %c0_18] : memref<72x64xf32, #tpu.memory_space<vmem>>, vector<24x64xf32>
      %30 = vector.broadcast %20 : vector<1x64xf32> to vector<24x64xf32>
      %31 = arith.subf %29, %30 : vector<24x64xf32>
      %32 = arith.mulf %31, %31 : vector<24x64xf32>
      %cst_19 = arith.constant dense<0.000000e+00> : vector<64xf32>
      %33 = vector.multi_reduction <add>, %32, %cst_19 [0] : vector<24x64xf32> to vector<64xf32>
      %34 = vector.shape_cast %33 : vector<64xf32> to vector<1x64xf32>
      %35 = arith.addf %28, %34 : vector<1x64xf32>
      %c48 = arith.constant 48 : index
      %c0_20 = arith.constant 0 : index
      %36 = vector.load %arg6[%c48, %c0_20] : memref<72x64xf32, #tpu.memory_space<vmem>>, vector<24x64xf32>
      %37 = vector.broadcast %20 : vector<1x64xf32> to vector<24x64xf32>
      %38 = arith.subf %36, %37 : vector<24x64xf32>
      %39 = arith.mulf %38, %38 : vector<24x64xf32>
      %cst_21 = arith.constant dense<0.000000e+00> : vector<64xf32>
      %40 = vector.multi_reduction <add>, %39, %cst_21 [0] : vector<24x64xf32> to vector<64xf32>
      %41 = vector.shape_cast %40 : vector<64xf32> to vector<1x64xf32>
      %42 = arith.addf %35, %41 : vector<1x64xf32>
      %cst_22 = arith.constant 0.013888889 : f32
      %43 = vector.broadcast %cst_22 : f32 to vector<1x64xf32>
      %44 = arith.mulf %42, %43 : vector<1x64xf32>
      %cst_23 = arith.constant 9.99999974E-6 : f32
      %45 = vector.broadcast %cst_23 : f32 to vector<1x64xf32>
      %46 = arith.addf %44, %45 : vector<1x64xf32>
      %47 = math.rsqrt %46 : vector<1x64xf32>
      %c0_24 = arith.constant 0 : index
      %c0_25 = arith.constant 0 : index
      %48 = vector.load %arg3[%c0_24, %c0_25] : memref<1x64xf32, #tpu.memory_space<vmem>>, vector<1x64xf32>
      %49 = arith.mulf %47, %48 : vector<1x64xf32>
      %c0_26 = arith.constant 0 : index
      %c0_27 = arith.constant 0 : index
      %50 = vector.load %arg4[%c0_26, %c0_27] : memref<1x64xf32, #tpu.memory_space<vmem>>, vector<1x64xf32>
      %51 = arith.mulf %20, %49 : vector<1x64xf32>
      %52 = arith.subf %50, %51 : vector<1x64xf32>
      %c0_28 = arith.constant 0 : index
      %c0_29 = arith.constant 0 : index
      %53 = vector.load %arg6[%c0_28, %c0_29] : memref<72x64xf32, #tpu.memory_space<vmem>>, vector<24x64xf32>
      %54 = vector.broadcast %49 : vector<1x64xf32> to vector<24x64xf32>
      %55 = arith.mulf %53, %54 : vector<24x64xf32>
      %56 = vector.broadcast %52 : vector<1x64xf32> to vector<24x64xf32>
      %57 = arith.addf %55, %56 : vector<24x64xf32>
      %cst_30 = arith.constant 0.000000e+00 : f32
      %58 = vector.broadcast %cst_30 : f32 to vector<24x64xf32>
      %59 = arith.cmpf oge, %57, %58 : vector<24x64xf32>
      %cst_31 = arith.constant 2.000000e-01 : f32
      %60 = vector.broadcast %cst_31 : f32 to vector<24x64xf32>
      %61 = arith.mulf %60, %57 : vector<24x64xf32>
      %62 = arith.select %59, %57, %61 : vector<24x64xi1>, vector<24x64xf32>
      %63 = arith.truncf %62 : vector<24x64xf32> to vector<24x64xbf16>
      %c0_32 = arith.constant 0 : index
      %c0_33 = arith.constant 0 : index
      %64 = vector.load %arg5[%c0_32, %c0_33] : memref<72x64xbf16, #tpu.memory_space<vmem>>, vector<24x64xbf16>
      tpu.vector_store %arg5[%c0_32, %c0_33], %63 {strides = array<i32>} : memref<72x64xbf16, #tpu.memory_space<vmem>>, vector<24x64xbf16>,
      %c24_34 = arith.constant 24 : index
      %c0_35 = arith.constant 0 : index
      %65 = vector.load %arg6[%c24_34, %c0_35] : memref<72x64xf32, #tpu.memory_space<vmem>>, vector<24x64xf32>
      %66 = vector.broadcast %49 : vector<1x64xf32> to vector<24x64xf32>
      %67 = arith.mulf %65, %66 : vector<24x64xf32>
      %68 = vector.broadcast %52 : vector<1x64xf32> to vector<24x64xf32>
      %69 = arith.addf %67, %68 : vector<24x64xf32>
      %cst_36 = arith.constant 0.000000e+00 : f32
      %70 = vector.broadcast %cst_36 : f32 to vector<24x64xf32>
      %71 = arith.cmpf oge, %69, %70 : vector<24x64xf32>
      %cst_37 = arith.constant 2.000000e-01 : f32
      %72 = vector.broadcast %cst_37 : f32 to vector<24x64xf32>
      %73 = arith.mulf %72, %69 : vector<24x64xf32>
      %74 = arith.select %71, %69, %73 : vector<24x64xi1>, vector<24x64xf32>
      %75 = arith.truncf %74 : vector<24x64xf32> to vector<24x64xbf16>
      %c24_38 = arith.constant 24 : index
      %c0_39 = arith.constant 0 : index
      %76 = vector.load %arg5[%c24_38, %c0_39] : memref<72x64xbf16, #tpu.memory_space<vmem>>, vector<24x64xbf16>
      tpu.vector_store %arg5[%c24_38, %c0_39], %75 {strides = array<i32>} : memref<72x64xbf16, #tpu.memory_space<vmem>>, vector<24x64xbf16>,
      %c48_40 = arith.constant 48 : index
      %c0_41 = arith.constant 0 : index
      %77 = vector.load %arg6[%c48_40, %c0_41] : memref<72x64xf32, #tpu.memory_space<vmem>>, vector<24x64xf32>
      %78 = vector.broadcast %49 : vector<1x64xf32> to vector<24x64xf32>
      %79 = arith.mulf %77, %78 : vector<24x64xf32>
      %80 = vector.broadcast %52 : vector<1x64xf32> to vector<24x64xf32>
      %81 = arith.addf %79, %80 : vector<24x64xf32>
      %cst_42 = arith.constant 0.000000e+00 : f32
      %82 = vector.broadcast %cst_42 : f32 to vector<24x64xf32>
      %83 = arith.cmpf oge, %81, %82 : vector<24x64xf32>
      %cst_43 = arith.constant 2.000000e-01 : f32
      %84 = vector.broadcast %cst_43 : f32 to vector<24x64xf32>
      %85 = arith.mulf %84, %81 : vector<24x64xf32>
      %86 = arith.select %83, %81, %85 : vector<24x64xi1>, vector<24x64xf32>
      %87 = arith.truncf %86 : vector<24x64xf32> to vector<24x64xbf16>
      %c48_44 = arith.constant 48 : index
      %c0_45 = arith.constant 0 : index
      %88 = vector.load %arg5[%c48_44, %c0_45] : memref<72x64xbf16, #tpu.memory_space<vmem>>, vector<24x64xbf16>
      tpu.vector_store %arg5[%c48_44, %c0_45], %87 {strides = array<i32>} : memref<72x64xbf16, #tpu.memory_space<vmem>>, vector<24x64xbf16>,
    } else {
    }
    return
  }
  func.func @transform_0(%arg0: i32) -> (i32, i32) {
    %c0_i32 = arith.constant 0 : i32
    %c0_i32_0 = arith.constant 0 : i32
    return %arg0, %c0_i32 : i32, i32
  }
  func.func @transform_1(%arg0: i32) -> (i32, i32) {
    %c0_i32 = arith.constant 0 : i32
    %c0_i32_0 = arith.constant 0 : i32
    %c0_i32_1 = arith.constant 0 : i32
    return %c0_i32, %c0_i32_0 : i32, i32
  }
  func.func @transform_2(%arg0: i32) -> (i32, i32) {
    %c0_i32 = arith.constant 0 : i32
    %c0_i32_0 = arith.constant 0 : i32
    %c0_i32_1 = arith.constant 0 : i32
    return %c0_i32, %c0_i32_0 : i32, i32
  }
  func.func @transform_3(%arg0: i32) -> (i32, i32) {
    %c0_i32 = arith.constant 0 : i32
    %c0_i32_0 = arith.constant 0 : i32
    %c0_i32_1 = arith.constant 0 : i32
    return %c0_i32, %c0_i32_0 : i32, i32
  }
  func.func @transform_4(%arg0: i32) -> (i32, i32) {
    %c0_i32 = arith.constant 0 : i32
    %c0_i32_0 = arith.constant 0 : i32
    %c0_i32_1 = arith.constant 0 : i32
    return %c0_i32, %c0_i32_0 : i32, i32
  }
}

module attributes {stable_mosaic.version = 11 : i64} {
  func.func @_conv_bn_lrelu_head_kernel(%arg0: i32, %arg1: memref<18x1024xbf16, #tpu.memory_space<vmem>>, %arg2: memref<1024x128xbf16, #tpu.memory_space<vmem>>, %arg3: memref<1x128xf32, #tpu.memory_space<vmem>>, %arg4: memref<1x128xf32, #tpu.memory_space<vmem>>, %arg5: memref<128x9xf32, #tpu.memory_space<vmem>>, %arg6: memref<18x1xi32, #tpu.memory_space<vmem>>, %arg7: memref<1x18xi32, #tpu.memory_space<vmem>>, %arg8: memref<2x1xf32, #tpu.memory_space<vmem>>, %arg9: memref<18x128xf32, #tpu.memory_space<vmem>>, %arg10: memref<1x128xf32, #tpu.memory_space<vmem>>, %arg11: memref<18x1xf32, #tpu.memory_space<vmem>>) attributes {dimension_semantics = [#tpu.dimension_semantics<arbitrary>], iteration_bounds = array<i64: 1>, scalar_prefetch = 0 : i64, scratch_operands = 3 : i64, tpu.core_type = #tpu.core_type<tc>, window_params = [{transform_indices = @transform_0, window_bounds = array<i64: 18, 1024>}, {pipeline_mode = #tpu.pipeline_mode<synchronous>, transform_indices = @transform_1, window_bounds = array<i64: 1024, 128>}, {pipeline_mode = #tpu.pipeline_mode<synchronous>, transform_indices = @transform_2, window_bounds = array<i64: 1, 128>}, {pipeline_mode = #tpu.pipeline_mode<synchronous>, transform_indices = @transform_3, window_bounds = array<i64: 1, 128>}, {pipeline_mode = #tpu.pipeline_mode<synchronous>, transform_indices = @transform_4, window_bounds = array<i64: 128, 9>}, {pipeline_mode = #tpu.pipeline_mode<synchronous>, transform_indices = @transform_5, window_bounds = array<i64: 18, 1>}, {pipeline_mode = #tpu.pipeline_mode<synchronous>, transform_indices = @transform_6, window_bounds = array<i64: 1, 18>}, {pipeline_mode = #tpu.pipeline_mode<synchronous>, transform_indices = @transform_7, window_bounds = array<i64: 2, 1>}]} {
    %c0_i32 = arith.constant 0 : i32
    %0 = arith.cmpi eq, %arg0, %c0_i32 : i32
    %1 = arith.extui %0 : i1 to i32
    %c0_i32_0 = arith.constant 0 : i32
    %2 = arith.cmpi ne, %1, %c0_i32_0 : i32
    scf.if %2 {
      %cst_12 = arith.constant 0.000000e+00 : f32
      %17 = vector.broadcast %cst_12 : f32 to vector<1x128xf32>
      %c0_13 = arith.constant 0 : index
      %c0_14 = arith.constant 0 : index
      %18 = vector.load %arg10[%c0_13, %c0_14] : memref<1x128xf32, #tpu.memory_space<vmem>>, vector<1x128xf32>
      tpu.vector_store %arg10[%c0_13, %c0_14], %17 {strides = array<i32>} : memref<1x128xf32, #tpu.memory_space<vmem>>, vector<1x128xf32>,
    } else {
    }
    %c0 = arith.constant 0 : index
    %c0_1 = arith.constant 0 : index
    %3 = vector.load %arg1[%c0, %c0_1] : memref<18x1024xbf16, #tpu.memory_space<vmem>>, vector<18x1024xbf16>
    %c0_2 = arith.constant 0 : index
    %c0_3 = arith.constant 0 : index
    %4 = vector.load %arg2[%c0_2, %c0_3] : memref<1024x128xbf16, #tpu.memory_space<vmem>>, vector<1024x128xbf16>
    %cst = arith.constant dense<0.000000e+00> : vector<18x128xf32>
    %5 = tpu.matmul %3, %4, %cst {dimension_numbers = #tpu.dot_dimension_numbers<[1], [0], [0], [1], [0, 0, 1, 1], [], []>} : vector<18x1024xbf16>, vector<1024x128xbf16>, vector<18x128xf32> -> vector<18x128xf32>
    %c18_i32 = arith.constant 18 : i32
    %6 = arith.muli %arg0, %c18_i32 : i32
    %7 = arith.index_cast %6 : i32 to index
    %c0_4 = arith.constant 0 : index
    %8 = vector.load %arg9[%7, %c0_4] : memref<18x128xf32, #tpu.memory_space<vmem>>, vector<18x128xf32>
    tpu.vector_store %arg9[%7, %c0_4], %5 {strides = array<i32>} : memref<18x128xf32, #tpu.memory_space<vmem>>, vector<18x128xf32>,
    %c0_5 = arith.constant 0 : index
    %c0_6 = arith.constant 0 : index
    %9 = vector.load %arg10[%c0_5, %c0_6] : memref<1x128xf32, #tpu.memory_space<vmem>>, vector<1x128xf32>
    %cst_7 = arith.constant dense<0.000000e+00> : vector<128xf32>
    %10 = vector.multi_reduction <add>, %5, %cst_7 [0] : vector<18x128xf32> to vector<128xf32>
    %11 = vector.shape_cast %10 : vector<128xf32> to vector<1x128xf32>
    %12 = arith.addf %9, %11 : vector<1x128xf32>
    %c0_8 = arith.constant 0 : index
    %c0_9 = arith.constant 0 : index
    %13 = vector.load %arg10[%c0_8, %c0_9] : memref<1x128xf32, #tpu.memory_space<vmem>>, vector<1x128xf32>
    tpu.vector_store %arg10[%c0_8, %c0_9], %12 {strides = array<i32>} : memref<1x128xf32, #tpu.memory_space<vmem>>, vector<1x128xf32>,
    %c0_i32_10 = arith.constant 0 : i32
    %14 = arith.cmpi eq, %arg0, %c0_i32_10 : i32
    %15 = arith.extui %14 : i1 to i32
    %c0_i32_11 = arith.constant 0 : i32
    %16 = arith.cmpi ne, %15, %c0_i32_11 : i32
    scf.if %16 {
      %c0_12 = arith.constant 0 : index
      %c0_13 = arith.constant 0 : index
      %17 = vector.load %arg10[%c0_12, %c0_13] : memref<1x128xf32, #tpu.memory_space<vmem>>, vector<1x128xf32>
      %cst_14 = arith.constant 0.055555556 : f32
      %18 = vector.broadcast %cst_14 : f32 to vector<1x128xf32>
      %19 = arith.mulf %17, %18 : vector<1x128xf32>
      %cst_15 = arith.constant 0.000000e+00 : f32
      %20 = vector.broadcast %cst_15 : f32 to vector<1x128xf32>
      %c0_16 = arith.constant 0 : index
      %c0_17 = arith.constant 0 : index
      %21 = vector.load %arg9[%c0_16, %c0_17] : memref<18x128xf32, #tpu.memory_space<vmem>>, vector<18x128xf32>
      %22 = vector.broadcast %19 : vector<1x128xf32> to vector<18x128xf32>
      %23 = arith.subf %21, %22 : vector<18x128xf32>
      %24 = arith.mulf %23, %23 : vector<18x128xf32>
      %cst_18 = arith.constant dense<0.000000e+00> : vector<128xf32>
      %25 = vector.multi_reduction <add>, %24, %cst_18 [0] : vector<18x128xf32> to vector<128xf32>
      %26 = vector.shape_cast %25 : vector<128xf32> to vector<1x128xf32>
      %27 = arith.addf %20, %26 : vector<1x128xf32>
      %cst_19 = arith.constant 0.055555556 : f32
      %28 = vector.broadcast %cst_19 : f32 to vector<1x128xf32>
      %29 = arith.mulf %27, %28 : vector<1x128xf32>
      %cst_20 = arith.constant 9.99999974E-6 : f32
      %30 = vector.broadcast %cst_20 : f32 to vector<1x128xf32>
      %31 = arith.addf %29, %30 : vector<1x128xf32>
      %32 = math.rsqrt %31 : vector<1x128xf32>
      %c0_21 = arith.constant 0 : index
      %c0_22 = arith.constant 0 : index
      %33 = vector.load %arg3[%c0_21, %c0_22] : memref<1x128xf32, #tpu.memory_space<vmem>>, vector<1x128xf32>
      %34 = arith.mulf %32, %33 : vector<1x128xf32>
      %c0_23 = arith.constant 0 : index
      %c0_24 = arith.constant 0 : index
      %35 = vector.load %arg4[%c0_23, %c0_24] : memref<1x128xf32, #tpu.memory_space<vmem>>, vector<1x128xf32>
      %36 = arith.mulf %19, %34 : vector<1x128xf32>
      %37 = arith.subf %35, %36 : vector<1x128xf32>
      %c0_25 = arith.constant 0 : index
      %c0_26 = arith.constant 0 : index
      %38 = vector.load %arg9[%c0_25, %c0_26] : memref<18x128xf32, #tpu.memory_space<vmem>>, vector<18x128xf32>
      %39 = vector.broadcast %34 : vector<1x128xf32> to vector<18x128xf32>
      %40 = arith.mulf %38, %39 : vector<18x128xf32>
      %41 = vector.broadcast %37 : vector<1x128xf32> to vector<18x128xf32>
      %42 = arith.addf %40, %41 : vector<18x128xf32>
      %cst_27 = arith.constant 0.000000e+00 : f32
      %43 = vector.broadcast %cst_27 : f32 to vector<18x128xf32>
      %44 = arith.cmpf oge, %42, %43 : vector<18x128xf32>
      %cst_28 = arith.constant 2.000000e-01 : f32
      %45 = vector.broadcast %cst_28 : f32 to vector<18x128xf32>
      %46 = arith.mulf %45, %42 : vector<18x128xf32>
      %47 = arith.select %44, %42, %46 : vector<18x128xi1>, vector<18x128xf32>
      %c0_29 = arith.constant 0 : index
      %c0_30 = arith.constant 0 : index
      %48 = vector.load %arg5[%c0_29, %c0_30] : memref<128x9xf32, #tpu.memory_space<vmem>>, vector<128x9xf32>
      %cst_31 = arith.constant dense<0.000000e+00> : vector<18x9xf32>
      %49 = tpu.matmul %47, %48, %cst_31 {dimension_numbers = #tpu.dot_dimension_numbers<[1], [0], [0], [1], [0, 0, 1, 1], [], []>} : vector<18x128xf32>, vector<128x9xf32>, vector<18x9xf32> -> vector<18x9xf32>
      %50 = tpu.iota {dimensions = array<i32: 1>} : vector<18x9xi32>
      %c0_32 = arith.constant 0 : index
      %c0_33 = arith.constant 0 : index
      %51 = vector.load %arg6[%c0_32, %c0_33] : memref<18x1xi32, #tpu.memory_space<vmem>>, vector<18x1xi32>
      %52 = vector.broadcast %51 : vector<18x1xi32> to vector<18x9xi32>
      %53 = arith.cmpi eq, %50, %52 : vector<18x9xi32>
      %cst_34 = arith.constant 0.000000e+00 : f32
      %54 = vector.broadcast %cst_34 : f32 to vector<18x9xf32>
      %55 = arith.select %53, %49, %54 : vector<18x9xi1>, vector<18x9xf32>
      %cst_35 = arith.constant dense<0.000000e+00> : vector<18xf32>
      %56 = vector.multi_reduction <add>, %55, %cst_35 [1] : vector<18x9xf32> to vector<18xf32>
      %57 = vector.shape_cast %56 : vector<18xf32> to vector<18x1xf32>
      %c0_36 = arith.constant 0 : index
      %c0_37 = arith.constant 0 : index
      %58 = vector.load %arg11[%c0_36, %c0_37] : memref<18x1xf32, #tpu.memory_space<vmem>>, vector<18x1xf32>
      tpu.vector_store %arg11[%c0_36, %c0_37], %57 {strides = array<i32>} : memref<18x1xf32, #tpu.memory_space<vmem>>, vector<18x1xf32>,
      %59 = tpu.iota {dimensions = array<i32: 0>} : vector<2x18xi32>
      %c0_38 = arith.constant 0 : index
      %c0_39 = arith.constant 0 : index
      %60 = vector.load %arg7[%c0_38, %c0_39] : memref<1x18xi32, #tpu.memory_space<vmem>>, vector<1x18xi32>
      %61 = vector.broadcast %60 : vector<1x18xi32> to vector<2x18xi32>
      %62 = arith.cmpi eq, %59, %61 : vector<2x18xi32>
      %63 = arith.extui %62 : vector<2x18xi1> to vector<2x18xi32>
      %64 = arith.sitofp %63 : vector<2x18xi32> to vector<2x18xf32>
      %c0_40 = arith.constant 0 : index
      %c0_41 = arith.constant 0 : index
      %65 = vector.load %arg11[%c0_40, %c0_41] : memref<18x1xf32, #tpu.memory_space<vmem>>, vector<18x1xf32>
      %cst_42 = arith.constant dense<0.000000e+00> : vector<2x1xf32>
      %66 = tpu.matmul %64, %65, %cst_42 {dimension_numbers = #tpu.dot_dimension_numbers<[1], [0], [0], [1], [0, 0, 1, 1], [], []>} : vector<2x18xf32>, vector<18x1xf32>, vector<2x1xf32> -> vector<2x1xf32>
      %cst_43 = arith.constant 0.000000e+00 : f32
      %67 = vector.broadcast %cst_43 : f32 to vector<2x1xf32>
      %68 = arith.subf %67, %66 : vector<2x1xf32>
      %69 = math.exp %68 : vector<2x1xf32>
      %cst_44 = arith.constant 1.000000e+00 : f32
      %70 = vector.broadcast %cst_44 : f32 to vector<2x1xf32>
      %71 = arith.addf %70, %69 : vector<2x1xf32>
      %cst_45 = arith.constant 1.000000e+00 : f32
      %72 = vector.broadcast %cst_45 : f32 to vector<2x1xf32>
      %73 = arith.divf %72, %71 : vector<2x1xf32>
      %c0_46 = arith.constant 0 : index
      %c0_47 = arith.constant 0 : index
      %74 = vector.load %arg8[%c0_46, %c0_47] : memref<2x1xf32, #tpu.memory_space<vmem>>, vector<2x1xf32>
      tpu.vector_store %arg8[%c0_46, %c0_47], %73 {strides = array<i32>} : memref<2x1xf32, #tpu.memory_space<vmem>>, vector<2x1xf32>,
    } else {
    }
    return
  }
  func.func @transform_0(%arg0: i32) -> (i32, i32) {
    %c0_i32 = arith.constant 0 : i32
    %c0_i32_0 = arith.constant 0 : i32
    return %arg0, %c0_i32 : i32, i32
  }
  func.func @transform_1(%arg0: i32) -> (i32, i32) {
    %c0_i32 = arith.constant 0 : i32
    %c0_i32_0 = arith.constant 0 : i32
    %c0_i32_1 = arith.constant 0 : i32
    return %c0_i32, %c0_i32_0 : i32, i32
  }
  func.func @transform_2(%arg0: i32) -> (i32, i32) {
    %c0_i32 = arith.constant 0 : i32
    %c0_i32_0 = arith.constant 0 : i32
    %c0_i32_1 = arith.constant 0 : i32
    return %c0_i32, %c0_i32_0 : i32, i32
  }
  func.func @transform_3(%arg0: i32) -> (i32, i32) {
    %c0_i32 = arith.constant 0 : i32
    %c0_i32_0 = arith.constant 0 : i32
    %c0_i32_1 = arith.constant 0 : i32
    return %c0_i32, %c0_i32_0 : i32, i32
  }
  func.func @transform_4(%arg0: i32) -> (i32, i32) {
    %c0_i32 = arith.constant 0 : i32
    %c0_i32_0 = arith.constant 0 : i32
    %c0_i32_1 = arith.constant 0 : i32
    return %c0_i32, %c0_i32_0 : i32, i32
  }
  func.func @transform_5(%arg0: i32) -> (i32, i32) {
    %c0_i32 = arith.constant 0 : i32
    %c0_i32_0 = arith.constant 0 : i32
    %c0_i32_1 = arith.constant 0 : i32
    return %c0_i32, %c0_i32_0 : i32, i32
  }
  func.func @transform_6(%arg0: i32) -> (i32, i32) {
    %c0_i32 = arith.constant 0 : i32
    %c0_i32_0 = arith.constant 0 : i32
    %c0_i32_1 = arith.constant 0 : i32
    return %c0_i32, %c0_i32_0 : i32, i32
  }
  func.func @transform_7(%arg0: i32) -> (i32, i32) {
    %c0_i32 = arith.constant 0 : i32
    %c0_i32_0 = arith.constant 0 : i32
    %c0_i32_1 = arith.constant 0 : i32
    return %c0_i32, %c0_i32_0 : i32, i32
  }
}

</mosaic_0001>

<bundles_post_ra>
// kernel: discriminator_forward.3
= control target key start
LH: loop header
LB: loop body
LE: loop exit
PB: predicated region body
PF: predicated region fallthrough
CT: control target
= control target key end

     0   :  { %s558_s9 = smov 0   ;;  %s607_s0 = inlined_call_operand.vmem [shape: bf16[288,16], index: 0, kind: input, shape index: {}]   ;;  %s608_s1 = inlined_call_operand.vmem [shape: bf16[16,32], index: 1, kind: input, shape index: {}]   ;;  %s609_s2 = inlined_call_operand.vmem [shape: bf16[288,32], index: 2, kind: output, shape index: {}]  }
   0x1 LB: > { %s451_s10 = sadd.s32 4294967295, %s541_s9   ;;  %p455_p0 = scmp.ge.s32.totalorder %s541_s9, 1  ;;  %s541_s9 = sphi %s558_s9, %s12_s9  }
   0x2   : > { %p113_p1 = scmp.lt.s32.totalorder %s541_s9, 4 }
   0x4   : > { %p114_p2 = pnand %p455_p0, %p113_p1 }
   0x5   : > { %s135_s13 = smul.u32 (!%p114_p2), 12, %s451_s10 }
   0x6   : > { %117 = sbr.rel (%p114_p2) target bundleno = 229 (0xe5), region = 28 }
   0x7   : > { %p136_p3 = scmp.lt.s32.totalorder (!%p114_p2), %s135_s13, 35 }
   0xb   : > { %v528_v0 = vld [vmem:[%s608_s1] sm:$0xff]   ;;  %s611_s13 = smov (!%p136_p3, %s135_s13), 35  ;;  %vm198_vm0 = vcmask 130048   ;;  %vm382_vm3 = vcmask 257024  }
   0xc   : > { %504 = vmatprep.subr.bf16.mxu0 %v528_v0  ;;  %518 = vmatprep.subr.bf16.mxu1 %v528_v0  ;;  %s456_s14 = sshll.u32 %s611_s13, 2 }
   0xd   : > { %505 = vmatpush3.bf16.msra.mxu0 %v528_v0  ;;  %519 = vmatpush3.bf16.msra.mxu1 %v528_v0  ;;  %s139_s17 = scalar_lea.vmem %s607_s0, %s456_s14  ;;  %s578_s20 = scalar_lea.vmem %s609_s2, %s456_s14 }
   0xe   : > { %v529_v1 = vld [vmem:[%s139_s17] sm:$0xff]   ;;  %v530_v2 = vld [vmem:[%s139_s17 + $0x10] sm:$0xff]   ;;  %v531_v3 = vld [vmem:[%s139_s17 + $0x8] sm:$0xff]  }
   0xf   : > { %506 = vmatprep.mubr.msk.bf16.mxu0 %vm198_vm0, %v529_v1  ;;  %510 = vmatprep.mubr.msk.bf16.mxu1 %vm198_vm0, %v530_v2  ;;  %v532_v4 = vld [vmem:[%s139_s17 + $0x18] sm:$0xff]   ;;  %v533_v5 = vld [vmem:[%s139_s17 + $0x20] sm:$0xff]   ;;  %v534_v6 = vld [vmem:[%s139_s17 + $0x28] sm:$0xff]  }
  0x10   : > { %507 = vmatmul.mubr.msk.bf16.vlgmr.msra.gmra.mxu0 %vm198_vm0, %v531_v3  ;;  %511 = vmatmul.mubr.msk.bf16.vlgmr.msra.gmra.mxu1 %vm198_vm0, %v532_v4 }
  0x11   : > { %514 = vmatprep.mubr.msk.bf16.mxu1 %vm198_vm0, %v533_v5 }
  0x18   : > { %515 = vmatmul.mubr.msk.bf16.gmra.mxu1 %vm198_vm0, %v534_v6 }
  0xd0   : > { %v508_v7 = vpop.f32.mrf.mxu0  ;;  %v512_v9 = vpop.f32.mrf.mxu1 }
  0xd1   : > { %vm300_vm1 = vcmp.ge.f32.partialorder %v508_v7, 0.0  ;;  %v312_v8 = vmul.f32 0.2, %v508_v7  ;;  %vm304_vm2 = vcmp.ge.f32.partialorder %v512_v9, 0.0  ;;  %v316_v10 = vmul.f32 0.2, %v512_v9 }
  0xd2   : > { %v251_v11 = vpop.f32.mrf.mxu0  ;;  %v267_v14 = vpop.f32.mrf.mxu1 }
  0xd3   : > { %v324_v12 = vsel %vm300_vm1, %v508_v7, %v312_v8  ;;  %vm298_vm4 = vcmp.ge.f32.partialorder %v251_v11, 0.0  ;;  %v310_v13 = vmul.f32 0.2, %v251_v11  ;;  %v328_v16 = vsel %vm304_vm2, %v512_v9, %v316_v10 }
  0xd4   : > { %v487_v15 = vpack.c.bf16 %v324_v12, %v324_v12  ;;  %vm302_vm5 = vcmp.ge.f32.partialorder %v267_v14, 0.0  ;;  %v314_v17 = vmul.f32 0.2, %v267_v14  ;;  %v509_v18 = vpop.f32.mrf.mxu0  ;;  %v491_v19 = vpack.c.bf16 %v328_v16, %v328_v16  ;;  %v513_v22 = vpop.f32.mrf.mxu1 }
  0xd5   : > { %v322_v20 = vsel %vm298_vm4, %v251_v11, %v310_v13  ;;  %vm301_vm6 = vcmp.ge.f32.partialorder %v509_v18, 0.0  ;;  %v313_v21 = vmul.f32 0.2, %v509_v18  ;;  %vm305_vm7 = vcmp.ge.f32.partialorder %v513_v22, 0.0 }
  0xd6   : > { %385 = vst.msk [vmem:[%s578_s20 + $0x8] sm:$0xf] %vm382_vm3, %v487_v15  ;;  %v485_v23 = vpack.c.bf16 %v322_v20, %v322_v20  ;;  %v326_v24 = vsel %vm302_vm5, %v267_v14, %v314_v17  ;;  %v317_v25 = vmul.f32 0.2, %v513_v22  ;;  %v254_v26 = vpop.f32.mrf.mxu0  ;;  %389 = vst.msk [vmem:[%s578_s20 + $0x18] sm:$0xf] %vm382_vm3, %v491_v19  ;;  %v270_v30 = vpop.f32.mrf.mxu1 }
  0xd7   : > { %v489_v27 = vpack.c.bf16 %v326_v24, %v326_v24  ;;  %v325_v28 = vsel %vm301_vm6, %v509_v18, %v313_v21  ;;  %vm299_vm8 = vcmp.ge.f32.partialorder %v254_v26, 0.0  ;;  %v311_v29 = vmul.f32 0.2, %v254_v26 }
  0xd8   : > { %383 = vst.msk [vmem:[%s578_s20] sm:$0xf] %vm382_vm3, %v485_v23  ;;  %v488_v31 = vpack.c.bf16 %v325_v28, %v325_v28  ;;  %v329_v32 = vsel %vm305_vm7, %v513_v22, %v317_v25  ;;  %vm303_vm9 = vcmp.ge.f32.partialorder %v270_v30, 0.0  ;;  %v315_v33 = vmul.f32 0.2, %v270_v30  ;;  %v516_v36 = vpop.f32.mrf.mxu1 }
  0xd9   : > { %387 = vst.msk [vmem:[%s578_s20 + $0x10] sm:$0xf] %vm382_vm3, %v489_v27  ;;  %v492_v34 = vpack.c.bf16 %v329_v32, %v329_v32  ;;  %v323_v35 = vsel %vm299_vm8, %v254_v26, %v311_v29  ;;  %vm308_vm10 = vcmp.ge.f32.partialorder %v516_v36, 0.0  ;;  %v320_v39 = vmul.f32 0.2, %v516_v36 }
  0xda   : > { %386 = vst.msk [vmem:[%s578_s20 + $0xc] sm:$0xf] %vm382_vm3, %v488_v31  ;;  %v486_v37 = vpack.c.bf16 %v323_v35, %v323_v35  ;;  %v327_v38 = vsel %vm303_vm9, %v270_v30, %v315_v33  ;;  %v283_v41 = vpop.f32.mrf.mxu1 }
  0xdb   : > { %390 = vst.msk [vmem:[%s578_s20 + $0x1c] sm:$0xf] %vm382_vm3, %v492_v34  ;;  %v490_v40 = vpack.c.bf16 %v327_v38, %v327_v38  ;;  %v332_v42 = vsel %vm308_vm10, %v516_v36, %v320_v39  ;;  %vm306_vm11 = vcmp.ge.f32.partialorder %v283_v41, 0.0  ;;  %v318_v43 = vmul.f32 0.2, %v283_v41 }
  0xdc   : > { %384 = vst.msk [vmem:[%s578_s20 + $0x4] sm:$0xf] %vm382_vm3, %v486_v37  ;;  %v495_v44 = vpack.c.bf16 %v332_v42, %v332_v42  ;;  %v517_v45 = vpop.f32.mrf.mxu1 }
  0xdd   : > { %388 = vst.msk [vmem:[%s578_s20 + $0x14] sm:$0xf] %vm382_vm3, %v490_v40  ;;  %v330_v46 = vsel %vm306_vm11, %v283_v41, %v318_v43  ;;  %vm309_vm12 = vcmp.ge.f32.partialorder %v517_v45, 0.0  ;;  %v321_v47 = vmul.f32 0.2, %v517_v45 }
  0xde   : > { %393 = vst.msk [vmem:[%s578_s20 + $0x28] sm:$0xf] %vm382_vm3, %v495_v44  ;;  %v493_v48 = vpack.c.bf16 %v330_v46, %v330_v46  ;;  %v286_v49 = vpop.f32.mrf.mxu1 }
  0xdf   : > { %v333_v50 = vsel %vm309_vm12, %v517_v45, %v321_v47  ;;  %vm307_vm13 = vcmp.ge.f32.partialorder %v286_v49, 0.0  ;;  %v319_v51 = vmul.f32 0.2, %v286_v49 }
  0xe0   : > { %391 = vst.msk [vmem:[%s578_s20 + $0x20] sm:$0xf] %vm382_vm3, %v493_v48  ;;  %v496_v52 = vpack.c.bf16 %v333_v50, %v333_v50 }
  0xe1   : > { %v331_v53 = vsel %vm307_vm13, %v286_v49, %v319_v51 }
  0xe2   : > { %394 = vst.msk [vmem:[%s578_s20 + $0x2c] sm:$0xf] %vm382_vm3, %v496_v52  ;;  %v494_v54 = vpack.c.bf16 %v331_v53, %v331_v53 }
  0xe4   : > { %392 = vst.msk [vmem:[%s578_s20 + $0x24] sm:$0xf] %vm382_vm3, %v494_v54 }
  0xe5 PF: > { %s12_s9 = sadd.s32 1, %s541_s9  }
  0xe6   : > { %p9_p4 = scmp.ge.s32.totalorder %s12_s9, 5  }
  0xe8   :  { %11 = sbr.rel (!%p9_p4) target bundleno = 1 (0x1), region = 58 }

// kernel: discriminator_forward.4
= control target key start
LH: loop header
LB: loop body
LE: loop exit
PB: predicated region body
PF: predicated region fallthrough
CT: control target
= control target key end

     0   :  { %s1043_s15 = smov 0   ;;  %s1269_s0 = inlined_call_operand.vmem [shape: bf16[72,512], index: 0, kind: input, shape index: {}]   ;;  %s1270_s1 = inlined_call_operand.vmem [shape: bf16[512,64], index: 1, kind: input, shape index: {}]   ;;  %s1271_s2 = inlined_call_operand.vmem [shape: f32[1,64], index: 2, kind: input, shape index: {}]   ;;  %s1272_s3 = inlined_call_operand.vmem [shape: f32[1,64], index: 3, kind: input, shape index: {}]   ;;  %s1273_s4 = inlined_call_operand.vmem [shape: bf16[72,64], index: 4, kind: output, shape index: {}]  }
   0x1 LB: > { %s1049_s16 = sadd.s32 4294967295, %s1015_s15   ;;  %p834_p0 = scmp.ge.s32.totalorder %s1015_s15, 1  ;;  %s1015_s15 = sphi %s1043_s15, %s14_s15  }
   0x2   : > { %p159_p1 = scmp.lt.s32.totalorder %s1015_s15, 4 }
   0x4   : > { %p160_p2 = pnand %p834_p0, %p159_p1 }
   0x5   : > { %s181_s17 = smul.u32 (!%p160_p2), 3, %s1049_s16  ;;  %p837_p4 = scmp.ne.s32.totalorder (!%p160_p2), %s1049_s16, 0 }
   0x6   : > { %163 = sbr.rel (%p160_p2) target bundleno = 357 (0x165), region = 36 }
   0x7   : > { %p182_p3 = scmp.lt.s32.totalorder (!%p160_p2), %s181_s17, 8 }
   0xb   : > { %s1275_s17 = smov (!%p182_p3, %s181_s17), 8  ;;  %192 = sbr.rel (%p837_p4) target bundleno = 18 (0x12), region = 40 }
   0xc   : > { %s890_s18 = sshll.u32 %s1275_s17, 4 }
   0xd   : > { %s1057_s21 = scalar_lea.vmem %s1269_s0, %s890_s18 }
  0x10   : > { %vm193_vm0 = vcmask 516096   ;;  %v1017_v0 = vmov 0.0  }
  0x11   : > { %194 = vst.msk [vmem:[#allocation3] sm:$0x1] %vm193_vm0, %v1017_v0 }
  0x12 PF: > { %v965_v1 = vld [vmem:[%s1270_s1 + $0x78] sm:$0xff]   ;;  %v969_v5 = vld [vmem:[%s1270_s1 + $0x70] sm:$0xff]   ;;  %v973_v9 = vld [vmem:[%s1270_s1 + $0x68] sm:$0xff]   ;;  %s587_s14 = smul.u32 24, %s1049_s16  ;;  %vm589_vm1 = vcmask 523264   ;;  %vm606_vm2 = vcmask 516096  }
  0x13   : > { %v966_v2 = vld [vmem:[%s1270_s1 + $0xf8] sm:$0xff]   ;;  %900 = vmatprep.subr.bf16.mxu0 %v965_v1  ;;  %v970_v6 = vld [vmem:[%s1270_s1 + $0xf0] sm:$0xff]   ;;  %v974_v10 = vld [vmem:[%s1270_s1 + $0xe8] sm:$0xff]   ;;  %p878_p5 = scmp.ne.s32.totalorder %s1049_s16, 2 }
  0x14   : > { %v967_v3 = vld [vmem:[%s1270_s1 + $0x38] sm:$0xff]   ;;  %928 = vmatprep.subr.bf16.mxu1 %v966_v2  ;;  %v971_v7 = vld [vmem:[%s1270_s1 + $0x30] sm:$0xff]   ;;  %v975_v11 = vld [vmem:[%s1270_s1 + $0x28] sm:$0xff]  }
  0x15   : > { %v968_v4 = vld [vmem:[%s1270_s1 + $0xb8] sm:$0xff]   ;;  %901 = vmatpush3.bf16.msra.mxu0 %v967_v3  ;;  %v972_v8 = vld [vmem:[%s1270_s1 + $0xb0] sm:$0xff]   ;;  %v976_v12 = vld [vmem:[%s1270_s1 + $0xa8] sm:$0xff]  }
  0x16   : > { %929 = vmatpush3.bf16.msra.mxu1 %v968_v4  ;;  %902 = vmatprep.subr.bf16.mxu0 %v969_v5  ;;  %v977_v13 = vld [vmem:[%s1270_s1 + $0x60] sm:$0xff]   ;;  %v981_v17 = vld [vmem:[%s1270_s1 + $0x58] sm:$0xff]   ;;  %v985_v21 = vld [vmem:[%s1270_s1 + $0x50] sm:$0xff]  }
  0x17   : > { %930 = vmatprep.subr.bf16.mxu1 %v970_v6  ;;  %v978_v14 = vld [vmem:[%s1270_s1 + $0xe0] sm:$0xff]   ;;  %v982_v18 = vld [vmem:[%s1270_s1 + $0xd8] sm:$0xff]   ;;  %v986_v22 = vld [vmem:[%s1270_s1 + $0xd0] sm:$0xff]  }
  0x18   : > { %v979_v15 = vld [vmem:[%s1270_s1 + $0x20] sm:$0xff]   ;;  %v983_v19 = vld [vmem:[%s1270_s1 + $0x18] sm:$0xff]   ;;  %v987_v23 = vld [vmem:[%s1270_s1 + $0x10] sm:$0xff]  }
  0x19   : > { %903 = vmatpush3.bf16.msra.mxu0 %v971_v7  ;;  %v980_v16 = vld [vmem:[%s1270_s1 + $0xa0] sm:$0xff]   ;;  %v984_v20 = vld [vmem:[%s1270_s1 + $0x98] sm:$0xff]   ;;  %v988_v24 = vld [vmem:[%s1270_s1 + $0x90] sm:$0xff]  }
  0x1a   : > { %931 = vmatpush3.bf16.msra.mxu1 %v972_v8  ;;  %904 = vmatprep.subr.bf16.mxu0 %v973_v9  ;;  %v989_v25 = vld [vmem:[%s1270_s1 + $0x48] sm:$0xff]   ;;  %v993_v29 = vld [vmem:[%s1270_s1 + $0x40] sm:$0xff]  }
  0x1b   : > { %932 = vmatprep.subr.bf16.mxu1 %v974_v10  ;;  %v990_v26 = vld [vmem:[%s1270_s1 + $0xc8] sm:$0xff]   ;;  %v994_v30 = vld [vmem:[%s1270_s1 + $0xc0] sm:$0xff]  }
  0x1c   : > { %v991_v27 = vld [vmem:[%s1270_s1 + $0x8] sm:$0xff]   ;;  %v995_v31 = vld [vmem:[%s1270_s1] sm:$0xff]  }
  0x1d   : > { %905 = vmatpush3.bf16.msra.mxu0 %v975_v11  ;;  %v992_v28 = vld [vmem:[%s1270_s1 + $0x88] sm:$0xff]   ;;  %v996_v32 = vld [vmem:[%s1270_s1 + $0x80] sm:$0xff]  }
  0x1e   : > { %933 = vmatpush3.bf16.msra.mxu1 %v976_v12  ;;  %906 = vmatprep.subr.bf16.mxu0 %v977_v13  ;;  %v997_v33 = vld [vmem:[%s1057_s21] ss:$16 sps:$4 sm:$0xff]   ;;  %v999_v34 = vld [vmem:[%s1057_s21 + $0x4] ss:$16 sps:$4 sm:$0xff]   ;;  %v1000_v35 = vld [vmem:[%s1057_s21 + $0x8] ss:$16 sps:$4 sm:$0xff]  }
  0x1f   : > { %934 = vmatprep.subr.bf16.mxu1 %v978_v14  ;;  %v1002_v36 = vld [vmem:[%s1057_s21 + $0xc] ss:$16 sps:$4 sm:$0xff]   ;;  %v199_v37 = vld [vmem:[%s1057_s21 + $0x20] sm:$0xff]  ;;  %523 = vmatprep.mubr.bf16.mxu0 %v999_v34  ;;  %v593_v14 = vld [vmem:[#allocation3] sm:$0x1] }
  0x20   : > { %v843_v38 = vcombine.high %v199_v37, %v199_v37  ;;  %v200_v39 = vld [vmem:[%s1057_s21 + $0x28] sm:$0xff]  ;;  %571 = vmatprep.mubr.bf16.mxu1 %v1002_v36  ;;  %v842_v41 = vcombine.low %v199_v37, %v199_v37  ;;  %s588_s21 = scalar_lea.vmem [#allocation2], %s587_s14 }
  0x21   : > { %907 = vmatpush3.bf16.msra.mxu0 %v979_v15  ;;  %v845_v40 = vcombine.high %v200_v39, %v200_v39  ;;  %v844_v42 = vcombine.low %v200_v39, %v200_v39 }
  0x22   : > { %935 = vmatpush3.bf16.msra.mxu1 %v980_v16  ;;  %908 = vmatprep.subr.bf16.mxu0 %v981_v17 }
  0x23   : > { %936 = vmatprep.subr.bf16.mxu1 %v982_v18 }
  0x25   : > { %909 = vmatpush3.bf16.msra.mxu0 %v983_v19 }
  0x26   : > { %937 = vmatpush3.bf16.msra.mxu1 %v984_v20  ;;  %910 = vmatprep.subr.bf16.mxu0 %v985_v21 }
  0x27   : > { %938 = vmatprep.subr.bf16.mxu1 %v986_v22 }
  0x29   : > { %911 = vmatpush3.bf16.msra.mxu0 %v987_v23 }
  0x2a   : > { %939 = vmatpush3.bf16.msra.mxu1 %v988_v24  ;;  %912 = vmatprep.subr.bf16.mxu0 %v989_v25 }
  0x2b   : > { %940 = vmatprep.subr.bf16.mxu1 %v990_v26 }
  0x2d   : > { %913 = vmatpush3.bf16.msra.mxu0 %v991_v27 }
  0x2e   : > { %941 = vmatpush3.bf16.msra.mxu1 %v992_v28  ;;  %914 = vmatprep.subr.bf16.mxu0 %v993_v29 }
  0x2f   : > { %942 = vmatprep.subr.bf16.mxu1 %v994_v30 }
  0x31   : > { %915 = vmatpush3.bf16.msra.mxu0 %v995_v31 }
  0x32   : > { %943 = vmatpush3.bf16.msra.mxu1 %v996_v32 }
  0x34   : > { %524 = vmatmul.mubr.bf16.vlgmr.msra.gmra.mxu0 %v997_v33 }
  0x35   : > { %572 = vmatmul.mubr.bf16.vlgmr.msra.gmra.mxu1 %v1000_v35  ;;  %531 = vmatprep.mubr.bf16.mxu0 %v843_v38 }
  0x36   : > { %579 = vmatprep.mubr.bf16.mxu1 %v845_v40 }
  0x3c   : > { %532 = vmatmul.mubr.bf16.gmra.mxu0 %v842_v41 }
  0x3d   : > { %580 = vmatmul.mubr.bf16.gmra.mxu1 %v844_v42 }
  0xf4   : > { %v916_v43 = vpop.f32.mrf.mxu0 }
  0xf5   : > { %v944_v44 = vpop.f32.mrf.mxu1 }
  0xf6   : > { %v917_v45 = vpop.f32.mrf.mxu0 }
  0xf7   : > { %v918_v46 = vadd.f32 %v917_v45, %v916_v43  ;;  %v945_v47 = vpop.f32.mrf.mxu1 }
  0xf8   : > { %v946_v48 = vadd.f32 %v945_v47, %v944_v44  ;;  %v919_v49 = vpop.f32.mrf.mxu0 }
  0xf9   : > { %v947_v50 = vpop.f32.mrf.mxu1 }
  0xfa   : > { %v574_v51 = vadd.f32 %v946_v48, %v918_v46  ;;  %v920_v52 = vpop.f32.mrf.mxu0 }
  0xfb   : > { %v921_v53 = vadd.f32 %v920_v52, %v919_v49  ;;  %v948_v54 = vpop.f32.mrf.mxu1 }
  0xfc   : > { %590 = vst.msk [vmem:[%s588_s21] sm:$0xff] %vm589_vm1, %v574_v51  ;;  %v949_v55 = vadd.f32 %v948_v54, %v947_v50  ;;  %v922_v56 = vpop.f32.mrf.mxu0  ;;  %v594_v2 = vsel %vm589_vm1, %v574_v51, 0.0 }
  0xfd   : > { %v950_v57 = vpop.f32.mrf.mxu1 }
  0xfe   : > { %v577_v58 = vadd.f32 %v949_v55, %v921_v53  ;;  %v923_v59 = vpop.f32.mrf.mxu0 }
  0xff   : > { %v924_v60 = vadd.f32 %v923_v59, %v922_v56  ;;  %v951_v61 = vpop.f32.mrf.mxu1 }
 0x100   : > { %591 = vst.msk [vmem:[%s588_s21 + $0x8] sm:$0xff] %vm589_vm1, %v577_v58  ;;  %v595_v62 = vsel %vm589_vm1, %v577_v58, 0.0  ;;  %v952_v63 = vadd.f32 %v951_v61, %v950_v57  ;;  %v925_v0 = vpop.f32.mrf.mxu0 }
 0x101   : > { %v953_v1 = vpop.f32.mrf.mxu1  ;;  %v596_v5 = vadd.f32 %v595_v62, %v594_v2 }
 0x102   : > { %v582_v3 = vadd.f32 %v952_v63, %v924_v60  ;;  %v926_v4 = vpop.f32.mrf.mxu0 }
 0x103   : > { %v954_v6 = vpop.f32.mrf.mxu1 }
 0x104   : > { %592 = vst.msk [vmem:[%s588_s21 + $0x10] sm:$0xff] %vm589_vm1, %v582_v3  ;;  %v597_v7 = vsel %vm589_vm1, %v582_v3, 0.0 }
 0x105   : > { %v598_v8 = vadd.f32 %v597_v7, %v596_v5 }
 0x107   : > { %v599_v9 = vrot.slane %v598_v8, 4 }
 0x109   : > { %v600_v10 = vadd.f32 %v599_v9, %v598_v8 }
 0x10b   : > { %v601_v11 = vrot.slane %v600_v10, 2 }
 0x10d   : > { %v602_v12 = vadd.f32 %v601_v11, %v600_v10 }
 0x10f   : > { %v603_v13 = vrot.slane %v602_v12, 1 }
 0x111   : > { %v604_v15 = vadd.f32 %v603_v13, %v602_v12  ;;  %611 = sbr.rel (%p878_p5) target bundleno = 357 (0x165), region = 44 }
 0x113   : > { %v605_v16 = vadd.f32 %v604_v15, %v593_v14 }
 0x115   : > { %607 = vst.msk [vmem:[#allocation3] sm:$0x1] %vm606_vm2, %v605_v16 }
 0x116   : > { %v618_v18 = vlaneseq  ;;  %v1172_v21 = vld [vmem:[#allocation2] sm:$0xff]  ;;  %v1174_v22 = vld [vmem:[#allocation2 + $0x8] sm:$0xff]  ;;  %v1178_v24 = vld [vmem:[#allocation2 + $0x10] sm:$0xff]  ;;  %vm729_vm3 = vcmask 519168  }
 0x117   : > { %v1180_v25 = vld [vmem:[#allocation2 + $0x18] sm:$0xff]  ;;  %v1182_v26 = vld [vmem:[#allocation2 + $0x20] sm:$0xff]  ;;  %v1186_v28 = vld [vmem:[#allocation2 + $0x28] sm:$0xff] }
 0x118   : > { %v619_v20 = vshrl.u32 %v618_v18, 7  ;;  %v1188_v29 = vld [vmem:[#allocation2 + $0x30] sm:$0xff]  ;;  %v1190_v30 = vld [vmem:[#allocation2 + $0x38] sm:$0xff]  ;;  %v1196_v35 = vld [vmem:[#allocation2 + $0x40] sm:$0xff] }
 0x11a   : > { %v1176_v23 = vsub.s32 0, %v619_v20 }
 0x11c   : > { %v612_v17 = vld [vmem:[#allocation3] sm:$0x1] }
 0x11d   : > { %v1170_v19 = vmul.f32 0.013888889, %v612_v17 }
 0x11f   : > { %v621_v27 = vrot.slane %v1170_v19, %v1176_v23 }
 0x121   : > { %v623_v31 = vsub.f32 %v1172_v21, %v621_v27  ;;  %v624_v32 = vsub.f32 %v1174_v22, %v621_v27  ;;  %v625_v33 = vsub.f32 %v1178_v24, %v621_v27  ;;  %v644_v34 = vsub.f32 %v1180_v25, %v621_v27 }
 0x122   : > { %v645_v36 = vsub.f32 %v1182_v26, %v621_v27  ;;  %v646_v37 = vsub.f32 %v1186_v28, %v621_v27  ;;  %v665_v38 = vsub.f32 %v1188_v29, %v621_v27  ;;  %v666_v39 = vsub.f32 %v1190_v30, %v621_v27 }
 0x123   : > { %v626_v40 = vmul.f32 %v623_v31, %v623_v31  ;;  %v627_v41 = vmul.f32 %v624_v32, %v624_v32  ;;  %v628_v42 = vmul.f32 %v625_v33, %v625_v33  ;;  %v647_v43 = vmul.f32 %v644_v34, %v644_v34  ;;  %v686_v33 = vld [vmem:[%s1271_s2] sm:$0x1] }
 0x124   : > { %v648_v44 = vmul.f32 %v645_v36, %v645_v36  ;;  %v649_v45 = vmul.f32 %v646_v37, %v646_v37  ;;  %v667_v46 = vsub.f32 %v1196_v35, %v621_v27  ;;  %v668_v47 = vmul.f32 %v665_v38, %v665_v38  ;;  %v688_v37 = vld [vmem:[%s1272_s3] sm:$0x1] }
 0x125   : > { %v629_v48 = vsel %vm589_vm1, %v626_v40, 0.0  ;;  %v630_v49 = vsel %vm589_vm1, %v627_v41, 0.0  ;;  %v632_v50 = vsel %vm589_vm1, %v628_v42, 0.0  ;;  %v650_v51 = vsel %vm589_vm1, %v647_v43, 0.0 }
 0x126   : > { %v631_v52 = vadd.f32 %v630_v49, %v629_v48  ;;  %v651_v53 = vsel %vm589_vm1, %v648_v44, 0.0  ;;  %v653_v54 = vsel %vm589_vm1, %v649_v45, 0.0  ;;  %v669_v55 = vmul.f32 %v666_v39, %v666_v39 }
 0x127   : > { %v652_v56 = vadd.f32 %v651_v53, %v650_v51  ;;  %v670_v57 = vmul.f32 %v667_v46, %v667_v46  ;;  %v671_v58 = vsel %vm589_vm1, %v668_v47, 0.0 }
 0x128   : > { %v633_v59 = vadd.f32 %v632_v50, %v631_v52  ;;  %v672_v60 = vsel %vm589_vm1, %v669_v55, 0.0 }
 0x129   : > { %v654_v61 = vadd.f32 %v653_v54, %v652_v56  ;;  %v673_v62 = vadd.f32 %v672_v60, %v671_v58  ;;  %v674_v63 = vsel %vm589_vm1, %v670_v57, 0.0 }
 0x12a   : > { %v634_v0 = vrot.slane %v633_v59, 4 }
 0x12b   : > { %v655_v1 = vrot.slane %v654_v61, 4  ;;  %v675_v2 = vadd.f32 %v674_v63, %v673_v62 }
 0x12c   : > { %v635_v3 = vadd.f32 %v634_v0, %v633_v59 }
 0x12d   : > { %v656_v4 = vadd.f32 %v655_v1, %v654_v61  ;;  %v676_v5 = vrot.slane %v675_v2, 4 }
 0x12e   : > { %v636_v6 = vrot.slane %v635_v3, 2 }
 0x12f   : > { %v657_v7 = vrot.slane %v656_v4, 2  ;;  %v677_v8 = vadd.f32 %v676_v5, %v675_v2 }
 0x130   : > { %v637_v9 = vadd.f32 %v636_v6, %v635_v3 }
 0x131   : > { %v658_v10 = vadd.f32 %v657_v7, %v656_v4  ;;  %v678_v11 = vrot.slane %v677_v8, 2 }
 0x132   : > { %v638_v12 = vrot.slane %v637_v9, 1 }
 0x133   : > { %v659_v13 = vrot.slane %v658_v10, 1  ;;  %v679_v14 = vadd.f32 %v678_v11, %v677_v8 }
 0x134   : > { %v639_v15 = vadd.f32 %v638_v12, %v637_v9 }
 0x135   : > { %v660_v16 = vadd.f32 %v659_v13, %v658_v10  ;;  %v680_v17 = vrot.slane %v679_v14, 1 }
 0x137   : > { %v661_v18 = vadd.f32 %v660_v16, %v639_v15  ;;  %v681_v20 = vadd.f32 %v680_v17, %v679_v14 }
 0x139   : > { %v682_v27 = vadd.f32 %v681_v20, %v661_v18 }
 0x13b   : > { %v683_v31 = vmul.f32 0.013888889, %v682_v27 }
 0x13d   : > { %v684_v32 = vadd.f32 1e-05, %v683_v31 }
 0x13f   : > { %1007 = vrsqrt.f32 %v684_v32 }
 0x14c   : > { %v1008_v34 = vpop.eup %1007 }
 0x14d   : > { %v687_v36 = vmul.f32 %v1008_v34, %v686_v33 }
 0x14f   : > { %v689_v38 = vmul.f32 %v687_v36, %v1170_v19  ;;  %v694_v39 = vrot.slane %v687_v36, %v1176_v23 }
 0x151   : > { %v690_v40 = vsub.f32 %v688_v37, %v689_v38  ;;  %v695_v41 = vmul.f32 %v694_v39, %v1172_v21  ;;  %v696_v42 = vmul.f32 %v694_v39, %v1174_v22  ;;  %v697_v43 = vmul.f32 %v694_v39, %v1178_v24 }
 0x152   : > { %v736_v44 = vmul.f32 %v694_v39, %v1180_v25  ;;  %v737_v45 = vmul.f32 %v694_v39, %v1182_v26  ;;  %v738_v46 = vmul.f32 %v694_v39, %v1186_v28  ;;  %v770_v47 = vmul.f32 %v694_v39, %v1188_v29 }
 0x153   : > { %v702_v48 = vrot.slane %v690_v40, %v1176_v23  ;;  %v771_v19 = vmul.f32 %v694_v39, %v1190_v30  ;;  %v772_v49 = vmul.f32 %v694_v39, %v1196_v35 }
 0x155   : > { %v704_v21 = vadd.f32 %v702_v48, %v695_v41  ;;  %v705_v50 = vadd.f32 %v702_v48, %v696_v42  ;;  %v706_v22 = vadd.f32 %v702_v48, %v697_v43  ;;  %v739_v51 = vadd.f32 %v736_v44, %v702_v48 }
 0x156   : > { %v740_v24 = vadd.f32 %v737_v45, %v702_v48  ;;  %v741_v52 = vadd.f32 %v738_v46, %v702_v48  ;;  %v773_v25 = vadd.f32 %v770_v47, %v702_v48  ;;  %v774_v53 = vadd.f32 %v771_v19, %v702_v48 }
 0x157   : > { %vm707_vm4 = vcmp.ge.f32.partialorder %v704_v21, 0.0  ;;  %v710_v26 = vmul.f32 0.2, %v704_v21  ;;  %vm708_vm5 = vcmp.ge.f32.partialorder %v705_v50, 0.0  ;;  %v711_v28 = vmul.f32 0.2, %v705_v50 }
 0x158   : > { %vm709_vm6 = vcmp.ge.f32.partialorder %v706_v22, 0.0  ;;  %v712_v29 = vmul.f32 0.2, %v706_v22  ;;  %vm742_vm7 = vcmp.ge.f32.partialorder %v739_v51, 0.0  ;;  %v745_v23 = vmul.f32 0.2, %v739_v51 }
 0x159   : > { %v713_v30 = vsel %vm707_vm4, %v704_v21, %v710_v26  ;;  %v714_v54 = vsel %vm708_vm5, %v705_v50, %v711_v28  ;;  %vm743_vm8 = vcmp.ge.f32.partialorder %v740_v24, 0.0  ;;  %v746_v35 = vmul.f32 0.2, %v740_v24 }
 0x15a   : > { %v891_v55 = vpack.c.bf16 %v713_v30, %v713_v30  ;;  %v892_v56 = vpack.c.bf16 %v714_v54, %v714_v54  ;;  %v715_v57 = vsel %vm709_vm6, %v706_v22, %v712_v29  ;;  %v748_v58 = vsel %vm742_vm7, %v739_v51, %v745_v23 }
 0x15b   : > { %v893_v59 = vpack.c.bf16 %v715_v57, %v715_v57  ;;  %v894_v60 = vpack.c.bf16 %v748_v58, %v748_v58  ;;  %v749_v61 = vsel %vm743_vm8, %v740_v24, %v746_v35  ;;  %vm744_vm9 = vcmp.ge.f32.partialorder %v741_v52, 0.0 }
 0x15c   : > { %730 = vst.msk [vmem:[%s1273_s4] sm:$0xf] %vm729_vm3, %v891_v55  ;;  %731 = vst.msk [vmem:[%s1273_s4 + $0x4] sm:$0xf] %vm729_vm3, %v892_v56  ;;  %v895_v62 = vpack.c.bf16 %v749_v61, %v749_v61  ;;  %v747_v63 = vmul.f32 0.2, %v741_v52  ;;  %v775_v2 = vadd.f32 %v772_v49, %v702_v48 }
 0x15d   : > { %vm776_vm10 = vcmp.ge.f32.partialorder %v773_v25, 0.0  ;;  %v779_v0 = vmul.f32 0.2, %v773_v25  ;;  %732 = vst.msk [vmem:[%s1273_s4 + $0x8] sm:$0xf] %vm729_vm3, %v893_v59  ;;  %vm777_vm11 = vcmp.ge.f32.partialorder %v774_v53, 0.0 }
 0x15e   : > { %764 = vst.msk [vmem:[%s1273_s4 + $0xc] sm:$0xf] %vm729_vm3, %v894_v60  ;;  %v780_v1 = vmul.f32 0.2, %v774_v53  ;;  %765 = vst.msk [vmem:[%s1273_s4 + $0x10] sm:$0xf] %vm729_vm3, %v895_v62  ;;  %v750_v3 = vsel %vm744_vm9, %v741_v52, %v747_v63 }
 0x15f   : > { %v782_v4 = vsel %vm776_vm10, %v773_v25, %v779_v0  ;;  %v896_v5 = vpack.c.bf16 %v750_v3, %v750_v3  ;;  %vm778_vm12 = vcmp.ge.f32.partialorder %v775_v2, 0.0  ;;  %v781_v9 = vmul.f32 0.2, %v775_v2 }
 0x160   : > { %v897_v6 = vpack.c.bf16 %v782_v4, %v782_v4  ;;  %v783_v7 = vsel %vm777_vm11, %v774_v53, %v780_v1 }
 0x161   : > { %v898_v8 = vpack.c.bf16 %v783_v7, %v783_v7  ;;  %766 = vst.msk [vmem:[%s1273_s4 + $0x14] sm:$0xf] %vm729_vm3, %v896_v5  ;;  %v784_v10 = vsel %vm778_vm12, %v775_v2, %v781_v9 }
 0x162   : > { %798 = vst.msk [vmem:[%s1273_s4 + $0x18] sm:$0xf] %vm729_vm3, %v897_v6  ;;  %v899_v11 = vpack.c.bf16 %v784_v10, %v784_v10 }
 0x163   : > { %799 = vst.msk [vmem:[%s1273_s4 + $0x1c] sm:$0xf] %vm729_vm3, %v898_v8 }
 0x164   : > { %800 = vst.msk [vmem:[%s1273_s4 + $0x20] sm:$0xf] %vm729_vm3, %v899_v11 }
 0x165 PF: > { %s14_s15 = sadd.s32 1, %s1015_s15  }
 0x166   : > { %p11_p6 = scmp.ge.s32.totalorder %s14_s15, 5  }
 0x168   :  { %13 = sbr.rel (!%p11_p6) target bundleno = 1 (0x1), region = 71 }

// kernel: discriminator_forward.5
= control target key start
LH: loop header
LB: loop body
LE: loop exit
PB: predicated region body
PF: predicated region fallthrough
CT: control target
= control target key end

     0   :  { %vm1483_vm0 = vmmov 0   ;;  %vm823_vm1 = vcmask 1041408   ;;  %vm1013_vm7 = vcmask 72704   ;;  %vm1020_vm8 = vcmask 66560   ;;  %s1865_s1 = inlined_call_operand.vmem [shape: bf16[1024,128], index: 1, kind: input, shape index: {}]   ;;  %s1866_s0 = inlined_call_operand.vmem [shape: bf16[18,1024], index: 0, kind: input, shape index: {}]   ;;  %s1867_s4 = inlined_call_operand.vmem [shape: f32[128,9], index: 4, kind: input, shape index: {}]   ;;  %s1868_s5 = inlined_call_operand.vmem [shape: s32[18,1], index: 5, kind: input, shape index: {}]   ;;  %s1869_s2 = inlined_call_operand.vmem [shape: f32[1,128], index: 2, kind: input, shape index: {}]   ;;  %s1870_s3 = inlined_call_operand.vmem [shape: f32[1,128], index: 3, kind: input, shape index: {}]   ;;  %s1871_s6 = inlined_call_operand.vmem [shape: s32[1,18], index: 6, kind: input, shape index: {}]   ;;  %s1872_s7 = inlined_call_operand.vmem [shape: f32[2,1], index: 7, kind: output, shape index: {}]  }
   0x1   :  { %v1404_v0 = vld [vmem:[%s1865_s1 + $0x78] sm:$0xff]   ;;  %v1408_v4 = vld [vmem:[%s1865_s1 + $0x70] sm:$0xff]   ;;  %v1412_v8 = vld [vmem:[%s1865_s1 + $0x68] sm:$0xff]   ;;  %vm1024_vm10 = vcmask 7168   ;;  %vm1027_vm11 = vcmask 1024   ;;  %vm1042_vm13 = vcmask 146432  }
   0x2   :  { %v1405_v1 = vld [vmem:[%s1865_s1 + $0xf8] sm:$0xff]   ;;  %1214 = vmatprep.subr.bf16.mxu0 %v1404_v0  ;;  %v1409_v5 = vld [vmem:[%s1865_s1 + $0xf0] sm:$0xff]   ;;  %v1413_v9 = vld [vmem:[%s1865_s1 + $0xe8] sm:$0xff]  }
   0x3   :  { %v1406_v2 = vld [vmem:[%s1865_s1 + $0x38] sm:$0xff]   ;;  %1242 = vmatprep.subr.bf16.mxu1 %v1405_v1  ;;  %v1410_v6 = vld [vmem:[%s1865_s1 + $0x30] sm:$0xff]   ;;  %v1414_v10 = vld [vmem:[%s1865_s1 + $0x28] sm:$0xff]  }
   0x4   :  { %v1407_v3 = vld [vmem:[%s1865_s1 + $0xb8] sm:$0xff]   ;;  %1215 = vmatpush3.bf16.msra.mxu0 %v1406_v2  ;;  %v1411_v7 = vld [vmem:[%s1865_s1 + $0xb0] sm:$0xff]   ;;  %v1415_v11 = vld [vmem:[%s1865_s1 + $0xa8] sm:$0xff]  }
   0x5   :  { %1243 = vmatpush3.bf16.msra.mxu1 %v1407_v3  ;;  %1216 = vmatprep.subr.bf16.mxu0 %v1408_v4  ;;  %v1416_v12 = vld [vmem:[%s1865_s1 + $0x60] sm:$0xff]   ;;  %v1420_v16 = vld [vmem:[%s1865_s1 + $0x58] sm:$0xff]   ;;  %v1424_v20 = vld [vmem:[%s1865_s1 + $0x50] sm:$0xff]  }
   0x6   :  { %1244 = vmatprep.subr.bf16.mxu1 %v1409_v5  ;;  %v1417_v13 = vld [vmem:[%s1865_s1 + $0xe0] sm:$0xff]   ;;  %v1421_v17 = vld [vmem:[%s1865_s1 + $0xd8] sm:$0xff]   ;;  %v1425_v21 = vld [vmem:[%s1865_s1 + $0xd0] sm:$0xff]  }
   0x7   :  { %v1418_v14 = vld [vmem:[%s1865_s1 + $0x20] sm:$0xff]   ;;  %v1422_v18 = vld [vmem:[%s1865_s1 + $0x18] sm:$0xff]   ;;  %v1426_v22 = vld [vmem:[%s1865_s1 + $0x10] sm:$0xff]  }
   0x8   :  { %1217 = vmatpush3.bf16.msra.mxu0 %v1410_v6  ;;  %v1419_v15 = vld [vmem:[%s1865_s1 + $0xa0] sm:$0xff]   ;;  %v1423_v19 = vld [vmem:[%s1865_s1 + $0x98] sm:$0xff]   ;;  %v1427_v23 = vld [vmem:[%s1865_s1 + $0x90] sm:$0xff]  }
   0x9   :  { %1245 = vmatpush3.bf16.msra.mxu1 %v1411_v7  ;;  %1218 = vmatprep.subr.bf16.mxu0 %v1412_v8  ;;  %v1428_v24 = vld [vmem:[%s1865_s1 + $0x48] sm:$0xff]   ;;  %v1432_v28 = vld [vmem:[%s1865_s1 + $0x40] sm:$0xff]   ;;  %v1436_v40 = vld [vmem:[%s1865_s1 + $0x178] sm:$0xff]  }
   0xa   :  { %1246 = vmatprep.subr.bf16.mxu1 %v1413_v9  ;;  %v1429_v25 = vld [vmem:[%s1865_s1 + $0xc8] sm:$0xff]   ;;  %v1433_v29 = vld [vmem:[%s1865_s1 + $0xc0] sm:$0xff]   ;;  %v1437_v41 = vld [vmem:[%s1865_s1 + $0x1f8] sm:$0xff]  }
   0xb   :  { %v1430_v26 = vld [vmem:[%s1865_s1 + $0x8] sm:$0xff]   ;;  %v1434_v30 = vld [vmem:[%s1865_s1] sm:$0xff]   ;;  %v1438_v42 = vld [vmem:[%s1865_s1 + $0x138] sm:$0xff]  }
   0xc   :  { %1219 = vmatpush3.bf16.msra.mxu0 %v1414_v10  ;;  %v1431_v27 = vld [vmem:[%s1865_s1 + $0x88] sm:$0xff]   ;;  %v1435_v31 = vld [vmem:[%s1865_s1 + $0x80] sm:$0xff]   ;;  %v1439_v43 = vld [vmem:[%s1865_s1 + $0x1b8] sm:$0xff]  }
   0xd   :  { %1247 = vmatpush3.bf16.msra.mxu1 %v1415_v11  ;;  %1220 = vmatprep.subr.bf16.mxu0 %v1416_v12  ;;  %v32_v32 = vld [vmem:[%s1866_s0] sm:$0xff]  ;;  %v33_v34 = vld [vmem:[%s1866_s0 + $0x8] sm:$0xff]  ;;  %v1440_v44 = vld [vmem:[%s1865_s1 + $0x170] sm:$0xff]  }
   0xe   :  { %1248 = vmatprep.subr.bf16.mxu1 %v1417_v13  ;;  %v36_v33 = vld [vmem:[%s1866_s0 + $0x20] sm:$0xff]  ;;  %v37_v37 = vld [vmem:[%s1866_s0 + $0x28] sm:$0xff]  ;;  %v1441_v45 = vld [vmem:[%s1865_s1 + $0x1f0] sm:$0xff]  }
   0xf   :  { %v1130_v35 = vcombine.low %v32_v32, %v36_v33  ;;  %v1131_v36 = vcombine.high %v32_v32, %v36_v33  ;;  %v1132_v38 = vcombine.low %v33_v34, %v37_v37  ;;  %v1133_v39 = vcombine.high %v33_v34, %v37_v37  ;;  %v1442_v46 = vld [vmem:[%s1865_s1 + $0x130] sm:$0xff]   ;;  %v1444_v48 = vld [vmem:[%s1865_s1 + $0x168] sm:$0xff]   ;;  %v1448_v52 = vld [vmem:[%s1865_s1 + $0x160] sm:$0xff]  }
  0x10   :  { %1221 = vmatpush3.bf16.msra.mxu0 %v1418_v14  ;;  %v1443_v47 = vld [vmem:[%s1865_s1 + $0x1b0] sm:$0xff]   ;;  %v1445_v49 = vld [vmem:[%s1865_s1 + $0x1e8] sm:$0xff]   ;;  %v1449_v53 = vld [vmem:[%s1865_s1 + $0x1e0] sm:$0xff]  }
  0x11   :  { %1249 = vmatpush3.bf16.msra.mxu1 %v1419_v15  ;;  %1222 = vmatprep.subr.bf16.mxu0 %v1420_v16  ;;  %v1446_v50 = vld [vmem:[%s1865_s1 + $0x128] sm:$0xff]   ;;  %v1450_v54 = vld [vmem:[%s1865_s1 + $0x120] sm:$0xff]   ;;  %v1452_v56 = vld [vmem:[%s1865_s1 + $0x158] sm:$0xff]  }
  0x12   :  { %1250 = vmatprep.subr.bf16.mxu1 %v1421_v17  ;;  %656 = vmatprep.mubr.bf16.mxu0 %v1131_v36  ;;  %v1447_v51 = vld [vmem:[%s1865_s1 + $0x1a8] sm:$0xff]   ;;  %v1451_v55 = vld [vmem:[%s1865_s1 + $0x1a0] sm:$0xff]   ;;  %v1453_v57 = vld [vmem:[%s1865_s1 + $0x1d8] sm:$0xff]  }
  0x13   :  { %704 = vmatprep.mubr.bf16.mxu1 %v1133_v39  ;;  %v40_v58 = vld [vmem:[%s1866_s0 + $0x40] sm:$0x11]  ;;  %v1455_v60 = vld [vmem:[%s1865_s1 + $0x118] sm:$0xff]   ;;  %v41_v63 = vld [vmem:[%s1866_s0 + $0x48] sm:$0x11] }
  0x14   :  { %1223 = vmatpush3.bf16.msra.mxu0 %v1422_v18  ;;  %v1139_v59 = vcombine.high %v40_v58, %v40_v58  ;;  %v1138_v61 = vcombine.low %v40_v58, %v40_v58  ;;  %v1456_v62 = vld [vmem:[%s1865_s1 + $0x198] sm:$0xff]   ;;  %v1141_v0 = vcombine.high %v41_v63, %v41_v63  ;;  %v1140_v1 = vcombine.low %v41_v63, %v41_v63  ;;  %v1460_v2 = vld [vmem:[%s1865_s1 + $0x150] sm:$0xff]   ;;  %v1464_v6 = vld [vmem:[%s1865_s1 + $0x148] sm:$0xff]  }
  0x15   :  { %1251 = vmatpush3.bf16.msra.mxu1 %v1423_v19  ;;  %1224 = vmatprep.subr.bf16.mxu0 %v1424_v20  ;;  %v1461_v3 = vld [vmem:[%s1865_s1 + $0x1d0] sm:$0xff]   ;;  %v1465_v7 = vld [vmem:[%s1865_s1 + $0x1c8] sm:$0xff]   ;;  %v1468_v10 = vld [vmem:[%s1865_s1 + $0x140] sm:$0xff]  }
  0x16   :  { %1252 = vmatprep.subr.bf16.mxu1 %v1425_v21  ;;  %v1462_v4 = vld [vmem:[%s1865_s1 + $0x110] sm:$0xff]   ;;  %v1466_v8 = vld [vmem:[%s1865_s1 + $0x108] sm:$0xff]   ;;  %v1469_v11 = vld [vmem:[%s1865_s1 + $0x1c0] sm:$0xff]  }
  0x17   :  { %v1463_v5 = vld [vmem:[%s1865_s1 + $0x190] sm:$0xff]   ;;  %v1467_v9 = vld [vmem:[%s1865_s1 + $0x188] sm:$0xff]   ;;  %v1470_v12 = vld [vmem:[%s1865_s1 + $0x100] sm:$0xff]  }
  0x18   :  { %1225 = vmatpush3.bf16.msra.mxu0 %v1426_v22  ;;  %v1471_v13 = vld [vmem:[%s1865_s1 + $0x180] sm:$0xff]   ;;  %v34_v14 = vld [vmem:[%s1866_s0 + $0x10] sm:$0xff]  ;;  %v35_v16 = vld [vmem:[%s1866_s0 + $0x18] sm:$0xff] }
  0x19   :  { %1253 = vmatpush3.bf16.msra.mxu1 %v1427_v23  ;;  %1226 = vmatprep.subr.bf16.mxu0 %v1428_v24  ;;  %v38_v15 = vld [vmem:[%s1866_s0 + $0x30] sm:$0xff]  ;;  %v39_v19 = vld [vmem:[%s1866_s0 + $0x38] sm:$0xff]  ;;  %v909_v32 = vld [vmem:[%s1867_s4 + $0x60] sm:$0xff] }
  0x1a   :  { %1254 = vmatprep.subr.bf16.mxu1 %v1429_v25  ;;  %v1134_v17 = vcombine.low %v34_v14, %v38_v15  ;;  %v1135_v18 = vcombine.high %v34_v14, %v38_v15  ;;  %v42_v20 = vld [vmem:[%s1866_s0 + $0x50] sm:$0x11]  ;;  %v43_v21 = vld [vmem:[%s1866_s0 + $0x58] sm:$0x11]  ;;  %v1136_v22 = vcombine.low %v35_v16, %v39_v19  ;;  %v1137_v23 = vcombine.high %v35_v16, %v39_v19  ;;  %v905_v36 = vld [vmem:[%s1867_s4 + $0x40] sm:$0xff] }
  0x1b   :  { %v1143_v24 = vcombine.high %v42_v20, %v42_v20  ;;  %v1145_v25 = vcombine.high %v43_v21, %v43_v21  ;;  %v908_v33 = vld [vmem:[%s1867_s4 + $0x58] sm:$0xff]  ;;  %v907_v34 = vld [vmem:[%s1867_s4 + $0x50] sm:$0xff]  ;;  %v902_v39 = vld [vmem:[%s1867_s4 + $0x28] sm:$0xff] }
  0x1c   :  { %1227 = vmatpush3.bf16.msra.mxu0 %v1430_v26  ;;  %v1142_v26 = vcombine.low %v42_v20, %v42_v20  ;;  %v904_v37 = vld [vmem:[%s1867_s4 + $0x38] sm:$0xff] }
  0x1d   :  { %1255 = vmatpush3.bf16.msra.mxu1 %v1431_v27  ;;  %1228 = vmatprep.subr.bf16.mxu0 %v1432_v28  ;;  %v1144_v27 = vcombine.low %v43_v21, %v43_v21  ;;  %v1482_v28 = vmov 0.0  }
  0x1e   :  { %1256 = vmatprep.subr.bf16.mxu1 %v1433_v29  ;;  %31 = vst [vmem:[#allocation3] sm:$0x1] %v1482_v28  ;;  %v912_v29 = vld [vmem:[%s1867_s4 + $0x78] sm:$0xff] }
  0x20   :  { %1229 = vmatpush3.bf16.msra.mxu0 %v1434_v30  ;;  %v911_v30 = vld [vmem:[%s1867_s4 + $0x70] sm:$0xff] }
  0x21   :  { %1257 = vmatpush3.bf16.msra.mxu1 %v1435_v31  ;;  %1270 = vmatprep.subr.bf16.mxu0 %v1436_v40  ;;  %v910_v31 = vld [vmem:[%s1867_s4 + $0x68] sm:$0xff]  ;;  %v901_v40 = vld [vmem:[%s1867_s4 + $0x20] sm:$0xff] }
  0x22   :  { %1298 = vmatprep.subr.bf16.mxu1 %v1437_v41  ;;  %v900_v41 = vld [vmem:[%s1867_s4 + $0x18] sm:$0xff] }
  0x23   :  { %657 = vmatmul.mubr.bf16.vlgmr.msra.gmra.mxu0 %v1130_v35  ;;  %v906_v35 = vld [vmem:[%s1867_s4 + $0x48] sm:$0xff] }
  0x24   :  { %705 = vmatmul.mubr.bf16.vlgmr.msra.gmra.mxu1 %v1132_v38  ;;  %1271 = vmatpush3.bf16.msra.mxu0 %v1438_v42  ;;  %v903_v38 = vld [vmem:[%s1867_s4 + $0x30] sm:$0xff] }
  0x25   :  { %1299 = vmatpush3.bf16.msra.mxu1 %v1439_v43  ;;  %1272 = vmatprep.subr.bf16.mxu0 %v1440_v44  ;;  %v899_v42 = vld [vmem:[%s1867_s4 + $0x10] sm:$0xff]  ;;  %v898_v43 = vld [vmem:[%s1867_s4 + $0x8] sm:$0xff]  ;;  %v897_v44 = vld [vmem:[%s1867_s4] sm:$0xff] }
  0x26   :  { %1300 = vmatprep.subr.bf16.mxu1 %v1441_v45  ;;  %664 = vmatprep.mubr.bf16.mxu0 %v1139_v59 }
  0x27   :  { %712 = vmatprep.mubr.bf16.mxu1 %v1141_v0 }
  0x28   :  { %1273 = vmatpush3.bf16.msra.mxu0 %v1442_v46 }
  0x29   :  { %1301 = vmatpush3.bf16.msra.mxu1 %v1443_v47  ;;  %1274 = vmatprep.subr.bf16.mxu0 %v1444_v48 }
  0x2a   :  { %1302 = vmatprep.subr.bf16.mxu1 %v1445_v49  ;;  %v1484_v49 = vmov 0  }
  0x2b   :  { %665 = vmatmul.mubr.bf16.gmra.mxu0 %v1138_v61  ;;  %1403 = vset.pattern.permute.xlu1 %v1484_v49 }
  0x2c   :  { %1275 = vmatpush3.bf16.msra.mxu0 %v1446_v50  ;;  %713 = vmatmul.mubr.bf16.gmra.mxu1 %v1140_v1  ;;  %v997_v50 = vld [vmem:[%s1868_s5 + $0x10] sm:$0x3] }
  0x2d   :  { %1303 = vmatpush3.bf16.msra.mxu1 %v1447_v51  ;;  %1276 = vmatprep.subr.bf16.mxu0 %v1448_v52  ;;  %v995_v51 = vld [vmem:[%s1868_s5] sm:$0xff] }
  0x2e   :  { %1304 = vmatprep.subr.bf16.mxu1 %v1449_v53  ;;  %752 = vmatprep.mubr.bf16.mxu0 %v1135_v18  ;;  %v996_v53 = vld [vmem:[%s1868_s5 + $0x8] sm:$0xff] }
  0x2f   :  { %800 = vmatprep.mubr.bf16.mxu1 %v1137_v23  ;;  %1402 = vset.pattern.permute.xlu0 %v1484_v49 }
  0x30   :  { %1277 = vmatpush3.bf16.msra.mxu0 %v1450_v54  ;;  %1005 = vperm.xlu0 %1402, %v997_v50   ;;  %v843_v50 = vlaneseq }
  0x31   :  { %1305 = vmatpush3.bf16.msra.mxu1 %v1451_v55  ;;  %1278 = vmatprep.subr.bf16.mxu0 %v1452_v56 }
  0x32   :  { %1306 = vmatprep.subr.bf16.mxu1 %v1453_v57  ;;  %999 = vperm.xlu1 %1403, %v995_v51   ;;  %v1836_v51 = vshrl.u32 %v843_v50, 7 }
  0x34   :  { %1279 = vmatpush3.bf16.msra.mxu0 %v1455_v60  ;;  %1002 = vperm.xlu0 %1402, %v996_v53  }
  0x35   :  { %1307 = vmatpush3.bf16.msra.mxu1 %v1456_v62  ;;  %1280 = vmatprep.subr.bf16.mxu0 %v1460_v2 }
  0x36   :  { %1308 = vmatprep.subr.bf16.mxu1 %v1461_v3 }
  0x38   :  { %1281 = vmatpush3.bf16.msra.mxu0 %v1462_v4 }
  0x39   :  { %1309 = vmatpush3.bf16.msra.mxu1 %v1463_v5  ;;  %1282 = vmatprep.subr.bf16.mxu0 %v1464_v6 }
  0x3a   :  { %1310 = vmatprep.subr.bf16.mxu1 %v1465_v7 }
  0x3c   :  { %1283 = vmatpush3.bf16.msra.mxu0 %v1466_v8 }
  0x3d   :  { %1311 = vmatpush3.bf16.msra.mxu1 %v1467_v9  ;;  %1284 = vmatprep.subr.bf16.mxu0 %v1468_v10 }
  0x3e   :  { %1312 = vmatprep.subr.bf16.mxu1 %v1469_v11 }
  0x40   :  { %1285 = vmatpush3.bf16.msra.mxu0 %v1470_v12 }
  0x41   :  { %1313 = vmatpush3.bf16.msra.mxu1 %v1471_v13  ;;  %1349 = vmatprep.subr.mxu0 %v1482_v28 }
  0x42   :  { %1390 = vmatprep.subr.mxu1 %v1482_v28 }
  0x43   :  { %753 = vmatmul.mubr.bf16.vlgmr.msra.gmra.mxu0 %v1134_v17 }
  0x44   :  { %801 = vmatmul.mubr.bf16.vlgmr.msra.gmra.mxu1 %v1136_v22  ;;  %760 = vmatprep.mubr.bf16.mxu0 %v1143_v24 }
  0x45   :  { %808 = vmatprep.mubr.bf16.mxu1 %v1145_v25  ;;  %1350 = vmatpush3.msra.mxu0 %v912_v29 }
  0x46   :  { %1351 = vmatprep.subr.mxu0 %v1482_v28 }
  0x47   :  { %1352 = vmatpush3.msra.mxu0 %v911_v30 }
  0x48   :  { %1353 = vmatprep.subr.mxu0 %v1482_v28 }
  0x49   :  { %1354 = vmatpush3.msra.mxu0 %v910_v31 }
  0x4a   :  { %1355 = vmatprep.subr.mxu0 %v1482_v28 }
  0x4b   :  { %761 = vmatmul.mubr.bf16.gmra.mxu0 %v1142_v26 }
  0x4c   :  { %809 = vmatmul.mubr.bf16.gmra.mxu1 %v1144_v27  ;;  %1381 = vmatprep.mubr.msk.f32.mxu0 %vm1483_vm0, %v1482_v28 }
  0x4d   :  { %1396 = vmatprep.mubr.msk.f32.mxu1 %vm1483_vm0, %v1482_v28  ;;  %1356 = vmatpush3.msra.mxu0 %v909_v32 }
  0x4e   :  { %1357 = vmatprep.subr.mxu0 %v1482_v28 }
  0x4f   :  { %1358 = vmatpush3.msra.mxu0 %v908_v33 }
  0x50   :  { %1359 = vmatprep.subr.mxu0 %v1482_v28 }
  0x51   :  { %1360 = vmatpush3.msra.mxu0 %v907_v34 }
  0x52   :  { %1361 = vmatprep.subr.mxu0 %v1482_v28 }
  0x53   :  { %1362 = vmatpush3.msra.mxu0 %v906_v35 }
  0x54   :  { %1363 = vmatprep.subr.mxu0 %v1482_v28 }
  0x55   :  { %1364 = vmatpush3.msra.mxu0 %v905_v36 }
  0x56   :  { %1365 = vmatprep.subr.mxu0 %v1482_v28 }
  0x57   :  { %1366 = vmatpush3.msra.mxu0 %v904_v37 }
  0x58   :  { %1367 = vmatprep.subr.mxu0 %v1482_v28 }
  0x59   :  { %1368 = vmatpush3.msra.mxu0 %v903_v38 }
  0x5a   :  { %1369 = vmatprep.subr.mxu0 %v1482_v28 }
  0x5b   :  { %1370 = vmatpush3.msra.mxu0 %v902_v39 }
  0x5c   :  { %1371 = vmatprep.subr.mxu0 %v1482_v28 }
  0x5d   :  { %1372 = vmatpush3.msra.mxu0 %v901_v40 }
  0x5e   :  { %1373 = vmatprep.subr.mxu0 %v1482_v28 }
  0x5f   :  { %1374 = vmatpush3.msra.mxu0 %v900_v41 }
  0x60   :  { %1375 = vmatprep.subr.mxu0 %v1482_v28 }
  0x61   :  { %1376 = vmatpush3.msra.mxu0 %v899_v42 }
  0x62   :  { %1377 = vmatprep.subr.mxu0 %v1482_v28 }
  0x63   :  { %1378 = vmatpush3.msra.mxu0 %v898_v43 }
  0x64   :  { %1379 = vmatprep.subr.mxu0 %v1482_v28 }
  0x65   :  { %1380 = vmatpush3.msra.mxu0 %v897_v44 }
  0xe3   :  { %v1230_v45 = vpop.f32.mrf.mxu0 }
  0xe4   :  { %v1258_v46 = vpop.f32.mrf.mxu1 }
  0xe5   :  { %v1231_v47 = vpop.f32.mrf.mxu0 }
  0xe6   :  { %v1259_v48 = vpop.f32.mrf.mxu1  ;;  %v1232_v1 = vadd.f32 %v1231_v47, %v1230_v45  ;;  %v821_v47 = vld [vmem:[#allocation3] sm:$0x1] }
  0xe7   :  { %v1233_v52 = vpop.f32.mrf.mxu0  ;;  %v1260_v2 = vadd.f32 %v1259_v48, %v1258_v46 }
  0xe8   :  { %v1261_v54 = vpop.f32.mrf.mxu1 }
  0xe9   :  { %v1234_v55 = vpop.f32.mrf.mxu0  ;;  %v707_v8 = vadd.f32 %v1260_v2, %v1232_v1 }
  0xea   :  { %v1262_v56 = vpop.f32.mrf.mxu1  ;;  %v1235_v5 = vadd.f32 %v1234_v55, %v1233_v52  ;;  %v845_v52 = vsub.s32 0, %v1836_v51 }
  0xeb   :  { %v1236_v57 = vpop.f32.mrf.mxu0  ;;  %v1263_v6 = vadd.f32 %v1262_v56, %v1261_v54 }
  0xec   :  { %v1264_v59 = vpop.f32.mrf.mxu1 }
  0xed   :  { %v1237_v58 = vpop.f32.mrf.mxu0  ;;  %v710_v15 = vadd.f32 %v1263_v6, %v1235_v5 }
  0xee   :  { %v1265_v61 = vpop.f32.mrf.mxu1  ;;  %v1238_v17 = vadd.f32 %v1237_v58, %v1236_v57 }
  0xef   :  { %v1239_v60 = vpop.f32.mrf.mxu0  ;;  %v1266_v18 = vadd.f32 %v1265_v61, %v1264_v59 }
  0xf0   :  { %v1267_v63 = vpop.f32.mrf.mxu1 }
  0xf1   :  { %v1240_v62 = vpop.f32.mrf.mxu0  ;;  %v715_v27 = vadd.f32 %v1266_v18, %v1238_v17 }
  0xf2   :  { %v1268_v0 = vpop.f32.mrf.mxu1 }
 0x103   :  { %v1286_v3 = vpop.f32.mrf.mxu0 }
 0x104   :  { %v1314_v4 = vpop.f32.mrf.mxu1 }
 0x105   :  { %v1287_v7 = vpop.f32.mrf.mxu0 }
 0x106   :  { %v1288_v9 = vadd.f32 %v1287_v7, %v1286_v3  ;;  %v1315_v10 = vpop.f32.mrf.mxu1 }
 0x107   :  { %v1289_v11 = vpop.f32.mrf.mxu0  ;;  %v1316_v13 = vadd.f32 %v1315_v10, %v1314_v4  ;;  %v867_v10 = vld [vmem:[%s1869_s2] sm:$0x1] }
 0x108   :  { %v755_v12 = vadd.f32 %v1288_v9, %v707_v8  ;;  %v1317_v14 = vpop.f32.mrf.mxu1 }
 0x109   :  { %v1290_v16 = vpop.f32.mrf.mxu0 }
 0x10a   :  { %v1832_v19 = vadd.f32 %v1316_v13, %v755_v12  ;;  %v1291_v20 = vadd.f32 %v1290_v16, %v1289_v11  ;;  %v1318_v21 = vpop.f32.mrf.mxu1  ;;  %v869_v13 = vld [vmem:[%s1870_s3] sm:$0x1] }
 0x10b   :  { %v1292_v22 = vpop.f32.mrf.mxu0  ;;  %v1319_v24 = vadd.f32 %v1318_v21, %v1317_v14 }
 0x10c   :  { %v758_v23 = vadd.f32 %v1291_v20, %v710_v15  ;;  %v1320_v25 = vpop.f32.mrf.mxu1 }
 0x10d   :  { %v1293_v26 = vpop.f32.mrf.mxu0 }
 0x10e   :  { %v806_v29 = vadd.f32 %v1319_v24, %v758_v23  ;;  %v1294_v30 = vadd.f32 %v1293_v26, %v1292_v22  ;;  %v1321_v31 = vpop.f32.mrf.mxu1 }
 0x10f   :  { %v1295_v32 = vpop.f32.mrf.mxu0  ;;  %v1322_v34 = vadd.f32 %v1321_v31, %v1320_v25 }
 0x110   :  { %v763_v33 = vadd.f32 %v1294_v30, %v715_v27  ;;  %v1323_v35 = vpop.f32.mrf.mxu1  ;;  %v822_v39 = vadd.f32 %v806_v29, %v1832_v19 }
 0x111   :  { %v1296_v36 = vpop.f32.mrf.mxu0  ;;  %v1000_v35 = vpop.permute.xlu1 %999 }
 0x112   :  { %v811_v37 = vadd.f32 %v1322_v34, %v763_v33  ;;  %v1324_v38 = vpop.f32.mrf.mxu1  ;;  %v994_v33 = vand.u32 127, %v843_v50  ;;  %v1210_v50 = vld [vmem:[%s1871_s6] ss:$0 sm:$0xff] }
 0x113   :  { %vm1036_vm12 = vcmp.eq.s32.totalorder %v1836_v51, %v1210_v50 }
 0x114   :  { %820 = vst [vmem:[#allocation2 + $0x8] sm:$0x3] %v811_v37  ;;  %v824_v40 = vsel %vm823_vm1, %v811_v37, 0.0  ;;  %vm1007_vm6 = vcmp.eq.s32.totalorder %v994_v33, %v1000_v35 }
 0x115   :  { %v825_v41 = vadd.f32 %v824_v40, %v822_v39 }
 0x117   :  { %v826_v42 = vrot.slane %v825_v41, 4 }
 0x119   :  { %v827_v43 = vadd.f32 %v826_v42, %v825_v41 }
 0x11b   :  { %v828_v44 = vrot.slane %v827_v43, 2  ;;  %v841_v56 = vld [vmem:[#allocation2 + $0x8] sm:$0x3] }
 0x11d   :  { %v829_v45 = vadd.f32 %v828_v44, %v827_v43 }
 0x11f   :  { %v830_v46 = vrot.slane %v829_v45, 1 }
 0x121   :  { %v831_v48 = vadd.f32 %v830_v46, %v829_v45 }
 0x123   :  { %v832_v49 = vadd.f32 %v831_v48, %v821_v47 }
 0x125   :  { %833 = vst [vmem:[#allocation3] sm:$0x1] %v832_v49 }
 0x12c   :  { %v837_v53 = vld [vmem:[#allocation3] sm:$0x1] }
 0x12d   :  { %v838_v54 = vmul.f32 0.055555556, %v837_v53 }
 0x12f   :  { %v846_v55 = vrot.slane %v838_v54, %v845_v52 }
 0x131   :  { %v848_v57 = vsub.f32 %v1832_v19, %v846_v55  ;;  %v849_v58 = vsub.f32 %v806_v29, %v846_v55  ;;  %v850_v59 = vsub.f32 %v841_v56, %v846_v55 }
 0x133   :  { %v851_v60 = vmul.f32 %v848_v57, %v848_v57  ;;  %v852_v61 = vmul.f32 %v849_v58, %v849_v58  ;;  %v853_v62 = vmul.f32 %v850_v59, %v850_v59 }
 0x135   :  { %v854_v63 = vadd.f32 %v852_v61, %v851_v60  ;;  %v855_v0 = vsel %vm823_vm1, %v853_v62, 0.0 }
 0x137   :  { %v856_v1 = vadd.f32 %v855_v0, %v854_v63 }
 0x139   :  { %v857_v2 = vrot.slane %v856_v1, 4 }
 0x13b   :  { %v858_v3 = vadd.f32 %v857_v2, %v856_v1 }
 0x13d   :  { %v859_v4 = vrot.slane %v858_v3, 2 }
 0x13f   :  { %v860_v5 = vadd.f32 %v859_v4, %v858_v3 }
 0x141   :  { %v861_v6 = vrot.slane %v860_v5, 1 }
 0x143   :  { %v862_v7 = vadd.f32 %v861_v6, %v860_v5 }
 0x145   :  { %v864_v8 = vmul.f32 0.055555556, %v862_v7 }
 0x147   :  { %v865_v9 = vadd.f32 1e-05, %v864_v8 }
 0x149   :  { %1476 = vrsqrt.f32 %v865_v9 }
 0x156   :  { %v1477_v11 = vpop.eup %1476 }
 0x157   :  { %v868_v12 = vmul.f32 %v1477_v11, %v867_v10 }
 0x159   :  { %v870_v14 = vmul.f32 %v868_v12, %v838_v54  ;;  %v875_v15 = vrot.slane %v868_v12, %v845_v52  ;;  %v1211_v54 = vsel %vm1036_vm12, 1.0, %v1482_v28 }
 0x15b   :  { %v871_v16 = vsub.f32 %v869_v13, %v870_v14  ;;  %v876_v17 = vmul.f32 %v875_v15, %v1832_v19  ;;  %v877_v20 = vmul.f32 %v875_v15, %v806_v29  ;;  %v878_v24 = vmul.f32 %v875_v15, %v841_v56  ;;  %v1006_v29 = vpop.permute.xlu0 %1005 }
 0x15c   :  { %vm1009_vm9 = vcmp.eq.s32.totalorder %v994_v33, %v1006_v29 }
 0x15d   :  { %v883_v18 = vrot.slane %v871_v16, %v845_v52 }
 0x15f   :  { %v885_v21 = vadd.f32 %v883_v18, %v876_v17  ;;  %v886_v22 = vadd.f32 %v883_v18, %v877_v20  ;;  %v887_v27 = vadd.f32 %v883_v18, %v878_v24  ;;  %v1003_v32 = vpop.permute.xlu0 %1002 }
 0x160   :  { %vm1008_vm5 = vcmp.eq.s32.totalorder %v994_v33, %v1003_v32 }
 0x161   :  { %vm888_vm2 = vcmp.ge.f32.partialorder %v885_v21, 0.0  ;;  %v891_v23 = vmul.f32 0.2, %v885_v21  ;;  %v892_v26 = vmul.f32 0.2, %v886_v22  ;;  %vm889_vm3 = vcmp.ge.f32.partialorder %v886_v22, 0.0 }
 0x162   :  { %v893_v31 = vmul.f32 0.2, %v887_v27  ;;  %vm890_vm4 = vcmp.ge.f32.partialorder %v887_v27, 0.0 }
 0x163   :  { %v894_v25 = vsel %vm888_vm2, %v885_v21, %v891_v23  ;;  %v895_v30 = vsel %vm889_vm3, %v886_v22, %v892_v26 }
 0x164   :  { %1382 = vmatmul.mubr.f32.vlgmr.msra.gmra.mxu0 %v894_v25  ;;  %v896_v19 = vsel %vm890_vm4, %v887_v27, %v893_v31 }
 0x165   :  { %1384 = vmatprep.mubr.msk.f32.mxu0 %vm1483_vm0, %v1482_v28 }
 0x168   :  { %1385 = vmatmul.mubr.f32.gmra.mxu0 %v895_v30 }
 0x169   :  { %1387 = vmatprep.mubr.msk.f32.mxu0 %vm1483_vm0, %v1482_v28 }
 0x16c   :  { %1388 = vmatmul.mubr.f32.gmra.mxu0 %v896_v19 }
 0x224   :  { %v979_v34 = vpop.f32.mrf.mxu0 }
 0x225   :  { %v1010_v41 = vsel %vm1007_vm6, %v979_v34, 0.0 }
 0x226   :  { %v1383_v36 = vpop.f32.mrf.mxu0  ;;  %v1014_v45 = vsel %vm1013_vm7, %v1010_v41, 0.0 }
 0x228   :  { %v984_v37 = vpop.f32.mrf.mxu0 }
 0x229   :  { %v1011_v38 = vsel %vm1008_vm5, %v984_v37, 0.0 }
 0x22a   :  { %v1386_v39 = vpop.f32.mrf.mxu0  ;;  %v1017_v40 = vsel %vm1013_vm7, %v1011_v38, 0.0 }
 0x22b   :  { %1018 = vadd.xlane.f32.xlu0 %v1017_v40 }
 0x22c   :  { %v989_v42 = vpop.f32.mrf.mxu0 }
 0x22d   :  { %v1012_v43 = vsel %vm1009_vm9, %v989_v42, 0.0 }
 0x22e   :  { %v1389_v44 = vpop.f32.mrf.mxu0  ;;  %v1021_v46 = vsel %vm1020_vm8, %v1012_v43, 0.0 }
 0x22f   :  { %1015 = vadd.xlane.f32.xlu0 %v1014_v45  ;;  %1022 = vadd.xlane.f32.xlu1 %v1021_v46 }
 0x2b4   :  { %v1019_v47 = vpop.xlane.xlu0 %1018 }
 0x2b5   :  { %1026 = vst.msk [vmem:[#allocation4 + $0x8] sm:$0xff] %vm1024_vm10, %v1019_v47 }
 0x2b8   :  { %v1016_v48 = vpop.xlane.xlu0 %1015  ;;  %v1023_v49 = vpop.xlane.xlu1 %1022 }
 0x2b9   :  { %1025 = vst.msk [vmem:[#allocation4] sm:$0xff] %vm1024_vm10, %v1016_v48 }
 0x2ba   :  { %1028 = vst.msk [vmem:[#allocation4 + $0x10] sm:$0x3] %vm1027_vm11, %v1023_v49 }
 0x2bc   :  { %v1040_v53 = vld [vmem:[#allocation4 + $0x8] sm:$0xff] }
 0x2c0   :  { %v1039_v55 = vld [vmem:[#allocation4] sm:$0xff] }
 0x2c1   :  { %v1041_v52 = vld [vmem:[#allocation4 + $0x10] sm:$0x3] }
 0x2c2   :  { %1391 = vmatpush3.msk.msra.mxu1 %vm823_vm1, %v1041_v52 }
 0x2c3   :  { %1392 = vmatprep.subr.mxu1 %v1482_v28 }
 0x2c4   :  { %1393 = vmatpush3.msra.mxu1 %v1040_v53 }
 0x2c5   :  { %1394 = vmatprep.subr.mxu1 %v1482_v28 }
 0x2c6   :  { %1395 = vmatpush3.msra.mxu1 %v1039_v55 }
 0x2c7   :  { %1397 = vmatmul.mubr.msk.f32.vlgmr.msra.gmra.mxu1 %vm1042_vm13, %v1211_v54 }
 0x387   :  { %v1115_v56 = vpop.f32.mrf.mxu1 }
 0x388   :  { %v1119_v57 = vsub.f32 0.0, %v1115_v56 }
 0x389   :  { %v1398_v58 = vpop.f32.mrf.mxu1 }
 0x38a   :  { %v1120_v59 = vmul.f32 1.442695, %v1119_v57 }
 0x38c   :  { %1478 = vpow2.f32 %v1120_v59 }
 0x399   :  { %v1479_v51 = vpop.eup %1478 }
 0x39a   :  { %v1122_v60 = vadd.f32 1.0, %v1479_v51 }
 0x39c   :  { %1480 = vrcp.f32 %v1122_v60 }
 0x3a9   :  { %v1481_v61 = vpop.eup %1480 }
 0x3aa   :  { %1125 = vst.msk [vmem:[%s1872_s7] sm:$0x3] %vm1027_vm11, %v1481_v61 }

</bundles_post_ra>
